<compile_context>
chip_gen: v7x
topology: tpu7x:2x2x1
jax: 0.10.0
libtpu: 0.0.40
codegen_flags: <defaults>
</compile_context>

<pallas_src>
import math

import jax
import jax.numpy as jnp
from jax.experimental import pallas as pl
from jax.experimental.pallas import tpu as pltpu

PI = math.pi
LOG2 = math.log(2.0)

# MXU operand dtype for the big one-hot gather / scatter matmuls.  The
# one-hots are exact in bf16; x1 / msg lose ~2^-9 relative (f32 accumulation
# is kept).  Set to jnp.float32 if bit-parity with a PyTorch f32 module is
# required (costs ~3x MXU passes on those two matmuls).
MXU_DTYPE = jnp.bfloat16


def _round_up(v, m):
    return ((v + m - 1) // m) * m


def _ssp(v):
    # shifted softplus: log(1 + exp(v)) - log(2); numerically stable; f32 VPU/EUP.
    return jnp.maximum(v, 0.0) + jnp.log1p(jnp.exp(-jnp.abs(v))) - LOG2


# ---------------------------------------------------------------------------
# Kernel 1: CFConv message passing + scatter-add aggregation.
#
# grid = (core_split, edge_tiles_per_split)
#   axis 0 ("parallel"): partitions the edge range -> both TensorCores on v7x
#                        get work even with a single graph / single node tile.
#   axis 1 ("arbitrary"): edge reduction axis (last), accumulated directly in
#                         the resident per-split output block (pl.when init).
# ---------------------------------------------------------------------------
def cfconv_aggregate_kernel(
    x_ref,       # [Np, Hp] f32 node features (resident)
    attr_ref,    # [TE, G]  edge_attr tile
    c_ref,       # [TE, 1]  cosine-cutoff per edge (0 on padded edges)
    src_ref,     # [TE, 1]  i32 source node per edge
    dst_ref,     # [1, TE]  i32 destination node per edge (== Np on padded edges)
    w_mlp1_ref,  # [G, Fp]
    b_mlp1_ref,  # [1, Fp]
    w_mlp2_ref,  # [Fp, Fp]
    b_mlp2_ref,  # [1, Fp]
    w_lin1_ref,  # [Hp, Fp]
    part_ref,    # [Np, Fp] f32 partial aggregation for this split (accumulator)
    x1_scr,      # [Np, Fp] bf16 scratch: lin1(x), cast ONCE per split
):
    f32 = jnp.float32
    e = pl.program_id(1)          # edge tile within this split (reduction axis)
    TE = attr_ref.shape[0]
    Np = x1_scr.shape[0]

    @pl.when(e == 0)
    def _init():
        # CFConv.lin1 (no bias) once per split; single f32 -> bf16 cast here.
        x1 = jnp.dot(x_ref[...], w_lin1_ref[...], preferred_element_type=f32)
        x1_scr[...] = x1.astype(x1_scr.dtype)
        part_ref[...] = jnp.zeros_like(part_ref)

    # ---- filter network: W = mlp(edge_attr) * C   (f32 elementwise) ----
    h = jnp.dot(attr_ref[...], w_mlp1_ref[...], preferred_element_type=f32)
    h = _ssp(h + b_mlp1_ref[...])
    w_filt = jnp.dot(h, w_mlp2_ref[...], preferred_element_type=f32)
    w_filt = (w_filt + b_mlp2_ref[...]) * c_ref[...]            # [TE, Fp]

    # ---- gather x1[src]: in-kernel one-hot on the MXU (bf16, f32 acc) ----
    # TODO(synk): for very large node counts replace this dense one-hot gather
    # with a scalar-prefetch / DMA row gather; the scatter one-hot below stays
    # (it performs the actual reduction).
    src_oh = (jax.lax.broadcasted_iota(jnp.int32, (TE, Np), 1)
              == src_ref[...]).astype(MXU_DTYPE)                # [TE, Np]
    x_j = jnp.dot(src_oh, x1_scr[...], preferred_element_type=f32)  # [TE, Fp]
    msg = x_j * w_filt                                          # [TE, Fp]

    # ---- scatter-add into the per-split accumulator (aggr='add') ----
    # Padded edges carry dst == Np (out of range) -> their one-hot column is
    # all zeros (hard guard); c == 0 on padded edges is only belt-and-braces.
    dst_oh = (jax.lax.broadcasted_iota(jnp.int32, (Np, TE), 0)
              == dst_ref[...]).astype(MXU_DTYPE)                # [Np, TE]
    part_ref[...] += jnp.dot(dst_oh, msg.astype(MXU_DTYPE),
                             preferred_element_type=f32)        # [Np, Fp]


# ---------------------------------------------------------------------------
# Kernel 2: combine the core-split partials + lin2 + shifted softplus + lin.
# Separate call so the epilogue is node-tiled / megacore-parallel and can
# overlap with kernel-1 writeback instead of serializing after the last
# scatter matmul.
# ---------------------------------------------------------------------------
def epilogue_kernel(part_ref, w_lin2_ref, b_lin2_ref, w_lin_ref, b_lin_ref,
                    out_ref):
    f32 = jnp.float32
    # sum of the (static, <= core_split) partials for this node tile
    agg = part_ref[0]
    for s in range(1, part_ref.shape[0]):
        agg = agg + part_ref[s]                                 # [TN, Fp]
    x2 = jnp.dot(agg, w_lin2_ref[...], preferred_element_type=f32) + b_lin2_ref[...]
    x3 = _ssp(x2)
    out = jnp.dot(x3, w_lin_ref[...], preferred_element_type=f32) + b_lin_ref[...]
    out_ref[...] = out.astype(out_ref.dtype)


def interaction_block(x, edge_index, edge_weight, edge_attr, params, cutoff,
                      *, edge_tile=512, node_tile=256, core_split=2,
                      vmem_limit_bytes=32 * 1024 * 1024):
    # vmem_limit_bytes=32 MiB is safe on every generation (v7x has 64 MiB/TC);
    # raise toward 64-96 MiB on v6e/v5e for very large graphs / bigger tiles.
    # TODO(synk): single-buffer the grid-invariant operands
    # (pipeline_mode=pl.Buffered(1)) and use bf16 residency for x/x1 when Np
    # reaches tens of thousands on v7x's 64 MiB VMEM.
    f32 = jnp.float32
    N, H = x.shape
    E, G = edge_attr.shape
    F = params["w_mlp1"].shape[1]

    Fp = _round_up(F, 128)                    # lane-dense filter dim
    Hp = _round_up(H, 128)                    # lane-dense hidden dim
    node_tile = _round_up(node_tile, 8)
    TN = min(node_tile, _round_up(N, 8))      # epilogue node tile (sublane aligned)
    Np = _round_up(N, TN)

    # Edge tiling.  dst is a lane-tiled row, so a multi-tile TE must be a
    # multiple of 128; a single tile (block == full array) may be any mult of 8.
    edge_tile = max(128, _round_up(edge_tile, 128))
    if E <= edge_tile:
        TE = _round_up(max(E, 8), 8)
        nsplit = 1
    else:
        TE = edge_tile
        nsplit = max(1, min(core_split, -(-E // TE)))
    Ep = _round_up(E, TE * nsplit)
    ET_total = Ep // TE
    ET_split = ET_total // nsplit

    # ---- glue: O(N)/O(E) padding + index prep (no O(E*N) arrays in HBM) ----
    x_p = jnp.zeros((Np, Hp), f32).at[:N, :H].set(x.astype(f32))
    attr_p = jnp.zeros((Ep, G), f32).at[:E, :].set(edge_attr.astype(f32))
    C = 0.5 * (jnp.cos(edge_weight.astype(f32) * PI / cutoff) + 1.0)
    c_p = jnp.zeros((Ep, 1), f32).at[:E, 0].set(C)             # padded edges: C = 0
    src_p = jnp.zeros((Ep, 1), jnp.int32).at[:E, 0].set(
        edge_index[0].astype(jnp.int32))
    # padded edges point at an out-of-range node -> never scattered
    dst_p = jnp.full((1, Ep), Np, jnp.int32).at[0, :E].set(
        edge_index[1].astype(jnp.int32))

    def pad_mat(w, r, c):
        return jnp.zeros((r, c), f32).at[:w.shape[0], :w.shape[1]].set(
            w.astype(f32))

    w_mlp1 = pad_mat(params["w_mlp1"], G, Fp)
    b_mlp1 = pad_mat(params["b_mlp1"], 1, Fp)
    w_mlp2 = pad_mat(params["w_mlp2"], Fp, Fp)
    b_mlp2 = pad_mat(params["b_mlp2"], 1, Fp)
    w_lin1 = pad_mat(params["w_lin1"], Hp, Fp)
    w_lin2 = pad_mat(params["w_lin2"], Fp, Hp)
    b_lin2 = pad_mat(params["b_lin2"], 1, Hp)
    w_lin = pad_mat(params["w_lin"], Hp, Hp)
    b_lin = pad_mat(params["b_lin"], 1, Hp)

    # ---------------- kernel 1: edge aggregation ----------------
    flops1 = int(
        2 * nsplit * Np * Hp * Fp              # lin1 (once per core split)
        + 2 * Ep * (G * Fp + Fp * Fp)          # filter network
        + 2 * Ep * Np * Fp                     # one-hot gather
        + 2 * Ep * Np * Fp                     # one-hot scatter-add
    )
    transcendentals1 = int(Ep * Fp)
    bytes1 = int(4 * (Np * Hp + Ep * (G + 3)
                      + G * Fp + Fp * Fp + Hp * Fp + 2 * Fp
                      + nsplit * Np * Fp))

    grid1 = (nsplit, ET_split)
    agg_parts = pl.pallas_call(
        cfconv_aggregate_kernel,
        out_shape=jax.ShapeDtypeStruct((nsplit * Np, Fp), f32),
        grid_spec=pltpu.PrefetchScalarGridSpec(
            num_scalar_prefetch=0,
            grid=grid1,
            in_specs=[
                pl.BlockSpec((Np, Hp), lambda c, e: (0, 0)),               # x (resident)
                pl.BlockSpec((TE, G), lambda c, e: (c * ET_split + e, 0)), # edge_attr
                pl.BlockSpec((TE, 1), lambda c, e: (c * ET_split + e, 0)), # cutoff
                pl.BlockSpec((TE, 1), lambda c, e: (c * ET_split + e, 0)), # src
                pl.BlockSpec((1, TE), lambda c, e: (0, c * ET_split + e)), # dst
                pl.BlockSpec((G, Fp), lambda c, e: (0, 0)),                # w_mlp1
                pl.BlockSpec((1, Fp), lambda c, e: (0, 0)),                # b_mlp1
                pl.BlockSpec((Fp, Fp), lambda c, e: (0, 0)),               # w_mlp2
                pl.BlockSpec((1, Fp), lambda c, e: (0, 0)),                # b_mlp2
                pl.BlockSpec((Hp, Fp), lambda c, e: (0, 0)),               # w_lin1
            ],
            out_specs=pl.BlockSpec((Np, Fp), lambda c, e: (c, 0)),
            scratch_shapes=[pltpu.VMEM((Np, Fp), MXU_DTYPE)],   # x1 (bf16, cast once)
        ),
        compiler_params=pltpu.CompilerParams(
            dimension_semantics=("parallel", "arbitrary"),
            vmem_limit_bytes=vmem_limit_bytes,
        ),
        cost_estimate=pl.CostEstimate(
            flops=flops1, transcendentals=transcendentals1,
            bytes_accessed=bytes1),
    )(x_p, attr_p, c_p, src_p, dst_p,
      w_mlp1, b_mlp1, w_mlp2, b_mlp2, w_lin1)

    parts3 = agg_parts.reshape(nsplit, Np, Fp)                 # metadata-only reshape

    # ---------------- kernel 2: combine + lin2 + ssp + lin ----------------
    out = pl.pallas_call(
        epilogue_kernel,
        out_shape=jax.ShapeDtypeStruct((Np, Hp), f32),
        grid_spec=pltpu.PrefetchScalarGridSpec(
            num_scalar_prefetch=0,
            grid=(Np // TN,),
            in_specs=[
                pl.BlockSpec((nsplit, TN, Fp), lambda i: (0, i, 0)),
                pl.BlockSpec((Fp, Hp), lambda i: (0, 0)),
                pl.BlockSpec((1, Hp), lambda i: (0, 0)),
                pl.BlockSpec((Hp, Hp), lambda i: (0, 0)),
                pl.BlockSpec((1, Hp), lambda i: (0, 0)),
            ],
            out_specs=pl.BlockSpec((TN, Hp), lambda i: (i, 0)),
        ),
        compiler_params=pltpu.CompilerParams(
            dimension_semantics=("parallel",),
            vmem_limit_bytes=vmem_limit_bytes,
        ),
        cost_estimate=pl.CostEstimate(
            flops=int(2 * Np * (Fp * Hp + Hp * Hp)),
            transcendentals=int(Np * Hp),
            bytes_accessed=int(4 * (nsplit * Np * Fp + Np * Hp
                                    + Fp * Hp + Hp * Hp + 2 * Hp))),
    )(parts3, w_lin2, b_lin2, w_lin, b_lin)

    return out[:N, :H]


def xavier_uniform(key, out_dim, in_dim):
    bound = math.sqrt(6.0 / (in_dim + out_dim))
    # torch Linear weight is [out, in]; return pre-transposed [in, out]
    w = jax.random.uniform(key, (out_dim, in_dim), jnp.float32, -bound, bound)
    return w.T


def reference(x, edge_index, edge_weight, edge_attr, params, cutoff):
    # pure-JAX f32 reference for verification
    C = 0.5 * (jnp.cos(edge_weight * PI / cutoff) + 1.0)
    h = edge_attr @ params["w_mlp1"] + params["b_mlp1"]
    h = jax.nn.softplus(h) - LOG2
    W = h @ params["w_mlp2"] + params["b_mlp2"]
    W = W * C[:, None]
    x1 = x @ params["w_lin1"]
    msg = x1[edge_index[0]] * W
    agg = jax.ops.segment_sum(msg, edge_index[1], num_segments=x.shape[0])
    x2 = agg @ params["w_lin2"] + params["b_lin2"]
    x3 = jax.nn.softplus(x2) - LOG2
    return x3 @ params["w_lin"] + params["b_lin"]


if __name__ == "__main__":
    hidden_channels = 32
    num_gaussians = 16
    num_filters = 32
    cutoff = 10.0

    N = 16     # nodes
    E = 300    # edges -> multi edge-tile + 2-way core-split path is exercised

    key = jax.random.PRNGKey(0)
    keys = jax.random.split(key, 10)

    params = {
        "w_mlp1": xavier_uniform(keys[0], num_filters, num_gaussians),        # [G, F]
        "b_mlp1": jnp.zeros((1, num_filters), jnp.float32),
        "w_mlp2": xavier_uniform(keys[1], num_filters, num_filters),          # [F, F]
        "b_mlp2": jnp.zeros((1, num_filters), jnp.float32),
        "w_lin1": xavier_uniform(keys[2], num_filters, hidden_channels),      # [H, F]
        "w_lin2": xavier_uniform(keys[3], hidden_channels, num_filters),      # [F, H]
        "b_lin2": jnp.zeros((1, hidden_channels), jnp.float32),
        "w_lin":  xavier_uniform(keys[4], hidden_channels, hidden_channels),  # [H, H]
        "b_lin":  jnp.zeros((1, hidden_channels), jnp.float32),
    }

    x = jax.random.normal(keys[5], (N, hidden_channels), jnp.float32)
    edge_attr = jax.random.normal(keys[6], (E, num_gaussians), jnp.float32)
    edge_weight = jax.random.uniform(keys[7], (E,), jnp.float32, 0.1, cutoff)
    src = jax.random.randint(keys[8], (E,), 0, N).astype(jnp.int32)
    dst = jax.random.randint(keys[9], (E,), 0, N).astype(jnp.int32)
    edge_index = jnp.stack([src, dst], axis=0)

    # small edge_tile / node_tile so the tiled + core-split code paths run even
    # at these small test shapes (defaults are 512 / 256 for real workloads).
    out = interaction_block(x, edge_index, edge_weight, edge_attr, params,
                            cutoff, edge_tile=128, node_tile=8, core_split=2)
    out = jax.block_until_ready(out)

    ref = reference(x, edge_index, edge_weight, edge_attr, params, cutoff)
    assert out.shape == (N, hidden_channels)
    # bf16 MXU operands on the gather/scatter path -> bf16-level tolerance
    # (set MXU_DTYPE = jnp.float32 for f32 parity with the PyTorch module).
    assert jnp.allclose(out, ref, atol=5e-2, rtol=5e-2), "mismatch vs reference"

    print("KERNEL_OK")
</pallas_src>

<mosaic_0001>
module attributes {stable_mosaic.version = 11 : i64} {
  func.func @cfconv_aggregate_kernel(%arg0: i32, %arg1: i32, %arg2: memref<16x128xf32, #tpu.memory_space<vmem>>, %arg3: memref<128x16xf32, #tpu.memory_space<vmem>>, %arg4: memref<128x1xf32, #tpu.memory_space<vmem>>, %arg5: memref<128x1xi32, #tpu.memory_space<vmem>>, %arg6: memref<1x128xi32, #tpu.memory_space<vmem>>, %arg7: memref<16x128xf32, #tpu.memory_space<vmem>>, %arg8: memref<1x128xf32, #tpu.memory_space<vmem>>, %arg9: memref<128x128xf32, #tpu.memory_space<vmem>>, %arg10: memref<1x128xf32, #tpu.memory_space<vmem>>, %arg11: memref<128x128xf32, #tpu.memory_space<vmem>>, %arg12: memref<16x128xf32, #tpu.memory_space<vmem>>, %arg13: memref<16x128xbf16, #tpu.memory_space<vmem>>) attributes {dimension_semantics = [#tpu.dimension_semantics<parallel>, #tpu.dimension_semantics<arbitrary>], iteration_bounds = array<i64: 2, 2>, scalar_prefetch = 0 : i64, scratch_operands = 1 : i64, tpu.core_type = #tpu.core_type<tc>, window_params = [{pipeline_mode = #tpu.pipeline_mode<synchronous>, transform_indices = @transform_0, window_bounds = array<i64: 16, 128>}, {transform_indices = @transform_1, window_bounds = array<i64: 128, 16>}, {transform_indices = @transform_2, window_bounds = array<i64: 128, 1>}, {transform_indices = @transform_3, window_bounds = array<i64: 128, 1>}, {transform_indices = @transform_4, window_bounds = array<i64: 1, 128>}, {pipeline_mode = #tpu.pipeline_mode<synchronous>, transform_indices = @transform_5, window_bounds = array<i64: 16, 128>}, {pipeline_mode = #tpu.pipeline_mode<synchronous>, transform_indices = @transform_6, window_bounds = array<i64: 1, 128>}, {pipeline_mode = #tpu.pipeline_mode<synchronous>, transform_indices = @transform_7, window_bounds = array<i64: 128, 128>}, {pipeline_mode = #tpu.pipeline_mode<synchronous>, transform_indices = @transform_8, window_bounds = array<i64: 1, 128>}, {pipeline_mode = #tpu.pipeline_mode<synchronous>, transform_indices = @transform_9, window_bounds = array<i64: 128, 128>}, {transform_indices = @transform_10, window_bounds = array<i64: 16, 128>}]} {
    %c0_i32 = arith.constant 0 : i32
    %0 = arith.cmpi eq, %arg1, %c0_i32 : i32
    %1 = arith.extui %0 : i1 to i32
    %c0_i32_0 = arith.constant 0 : i32
    %2 = arith.cmpi ne, %1, %c0_i32_0 : i32
    scf.if %2 {
      %c0_28 = arith.constant 0 : index
      %c0_29 = arith.constant 0 : index
      %49 = vector.load %arg2[%c0_28, %c0_29] : memref<16x128xf32, #tpu.memory_space<vmem>>, vector<16x128xf32>
      %c0_30 = arith.constant 0 : index
      %c0_31 = arith.constant 0 : index
      %50 = vector.load %arg11[%c0_30, %c0_31] : memref<128x128xf32, #tpu.memory_space<vmem>>, vector<128x128xf32>
      %cst_32 = arith.constant dense<0.000000e+00> : vector<16x128xf32>
      %51 = tpu.matmul %49, %50, %cst_32 {dimension_numbers = #tpu.dot_dimension_numbers<[1], [0], [0], [1], [0, 0, 1, 1], [], []>} : vector<16x128xf32>, vector<128x128xf32>, vector<16x128xf32> -> vector<16x128xf32>
      %52 = arith.truncf %51 : vector<16x128xf32> to vector<16x128xbf16>
      %c0_33 = arith.constant 0 : index
      %c0_34 = arith.constant 0 : index
      %53 = vector.load %arg13[%c0_33, %c0_34] : memref<16x128xbf16, #tpu.memory_space<vmem>>, vector<16x128xbf16>
      tpu.vector_store %arg13[%c0_33, %c0_34], %52 {strides = array<i32>} : memref<16x128xbf16, #tpu.memory_space<vmem>>, vector<16x128xbf16>,
      %cst_35 = arith.constant 0.000000e+00 : f32
      %54 = vector.broadcast %cst_35 : f32 to vector<16x128xf32>
      %c0_36 = arith.constant 0 : index
      %c0_37 = arith.constant 0 : index
      %55 = vector.load %arg12[%c0_36, %c0_37] : memref<16x128xf32, #tpu.memory_space<vmem>>, vector<16x128xf32>
      tpu.vector_store %arg12[%c0_36, %c0_37], %54 {strides = array<i32>} : memref<16x128xf32, #tpu.memory_space<vmem>>, vector<16x128xf32>,
    } else {
    }
    %c0 = arith.constant 0 : index
    %c0_1 = arith.constant 0 : index
    %3 = vector.load %arg3[%c0, %c0_1] : memref<128x16xf32, #tpu.memory_space<vmem>>, vector<128x16xf32>
    %c0_2 = arith.constant 0 : index
    %c0_3 = arith.constant 0 : index
    %4 = vector.load %arg7[%c0_2, %c0_3] : memref<16x128xf32, #tpu.memory_space<vmem>>, vector<16x128xf32>
    %cst = arith.constant dense<0.000000e+00> : vector<128x128xf32>
    %5 = tpu.matmul %3, %4, %cst {dimension_numbers = #tpu.dot_dimension_numbers<[1], [0], [0], [1], [0, 0, 1, 1], [], []>} : vector<128x16xf32>, vector<16x128xf32>, vector<128x128xf32> -> vector<128x128xf32>
    %c0_4 = arith.constant 0 : index
    %c0_5 = arith.constant 0 : index
    %6 = vector.load %arg8[%c0_4, %c0_5] : memref<1x128xf32, #tpu.memory_space<vmem>>, vector<1x128xf32>
    %7 = vector.broadcast %6 : vector<1x128xf32> to vector<128x128xf32>
    %8 = arith.addf %5, %7 : vector<128x128xf32>
    %cst_6 = arith.constant 0.000000e+00 : f32
    %9 = vector.broadcast %cst_6 : f32 to vector<128x128xf32>
    %10 = arith.maximumf %8, %9 : vector<128x128xf32>
    %11 = math.absf %8 : vector<128x128xf32>
    %cst_7 = arith.constant 0.000000e+00 : f32
    %12 = vector.broadcast %cst_7 : f32 to vector<128x128xf32>
    %13 = arith.subf %12, %11 : vector<128x128xf32>
    %14 = math.exp %13 : vector<128x128xf32>
    %15 = math.log1p %14 : vector<128x128xf32>
    %16 = arith.addf %10, %15 : vector<128x128xf32>
    %cst_8 = arith.constant 0.693147182 : f32
    %17 = vector.broadcast %cst_8 : f32 to vector<128x128xf32>
    %18 = arith.subf %16, %17 : vector<128x128xf32>
    %c0_9 = arith.constant 0 : index
    %c0_10 = arith.constant 0 : index
    %19 = vector.load %arg9[%c0_9, %c0_10] : memref<128x128xf32, #tpu.memory_space<vmem>>, vector<128x128xf32>
    %cst_11 = arith.constant dense<0.000000e+00> : vector<128x128xf32>
    %20 = tpu.matmul %18, %19, %cst_11 {dimension_numbers = #tpu.dot_dimension_numbers<[1], [0], [0], [1], [0, 0, 1, 1], [], []>} : vector<128x128xf32>, vector<128x128xf32>, vector<128x128xf32> -> vector<128x128xf32>
    %c0_12 = arith.constant 0 : index
    %c0_13 = arith.constant 0 : index
    %21 = vector.load %arg10[%c0_12, %c0_13] : memref<1x128xf32, #tpu.memory_space<vmem>>, vector<1x128xf32>
    %22 = vector.broadcast %21 : vector<1x128xf32> to vector<128x128xf32>
    %23 = arith.addf %20, %22 : vector<128x128xf32>
    %c0_14 = arith.constant 0 : index
    %c0_15 = arith.constant 0 : index
    %24 = vector.load %arg4[%c0_14, %c0_15] : memref<128x1xf32, #tpu.memory_space<vmem>>, vector<128x1xf32>
    %25 = vector.broadcast %24 : vector<128x1xf32> to vector<128x128xf32>
    %26 = arith.mulf %23, %25 : vector<128x128xf32>
    %27 = tpu.iota {dimensions = array<i32: 1>} : vector<128x16xi32>
    %c0_16 = arith.constant 0 : index
    %c0_17 = arith.constant 0 : index
    %28 = vector.load %arg5[%c0_16, %c0_17] : memref<128x1xi32, #tpu.memory_space<vmem>>, vector<128x1xi32>
    %29 = vector.broadcast %28 : vector<128x1xi32> to vector<128x16xi32>
    %30 = arith.cmpi eq, %27, %29 : vector<128x16xi32>
    %31 = arith.extui %30 : vector<128x16xi1> to vector<128x16xi32>
    %32 = arith.sitofp %31 : vector<128x16xi32> to vector<128x16xf32>
    %33 = arith.truncf %32 : vector<128x16xf32> to vector<128x16xbf16>
    %c0_18 = arith.constant 0 : index
    %c0_19 = arith.constant 0 : index
    %34 = vector.load %arg13[%c0_18, %c0_19] : memref<16x128xbf16, #tpu.memory_space<vmem>>, vector<16x128xbf16>
    %cst_20 = arith.constant dense<0.000000e+00> : vector<128x128xf32>
    %35 = tpu.matmul %33, %34, %cst_20 {dimension_numbers = #tpu.dot_dimension_numbers<[1], [0], [0], [1], [0, 0, 1, 1], [], []>} : vector<128x16xbf16>, vector<16x128xbf16>, vector<128x128xf32> -> vector<128x128xf32>
    %36 = arith.mulf %35, %26 : vector<128x128xf32>
    %37 = tpu.iota {dimensions = array<i32: 0>} : vector<16x128xi32>
    %c0_21 = arith.constant 0 : index
    %c0_22 = arith.constant 0 : index
    %38 = vector.load %arg6[%c0_21, %c0_22] : memref<1x128xi32, #tpu.memory_space<vmem>>, vector<1x128xi32>
    %39 = vector.broadcast %38 : vector<1x128xi32> to vector<16x128xi32>
    %40 = arith.cmpi eq, %37, %39 : vector<16x128xi32>
    %41 = arith.extui %40 : vector<16x128xi1> to vector<16x128xi32>
    %42 = arith.sitofp %41 : vector<16x128xi32> to vector<16x128xf32>
    %43 = arith.truncf %42 : vector<16x128xf32> to vector<16x128xbf16>
    %c0_23 = arith.constant 0 : index
    %c0_24 = arith.constant 0 : index
    %44 = vector.load %arg12[%c0_23, %c0_24] : memref<16x128xf32, #tpu.memory_space<vmem>>, vector<16x128xf32>
    %45 = arith.truncf %36 : vector<128x128xf32> to vector<128x128xbf16>
    %cst_25 = arith.constant dense<0.000000e+00> : vector<16x128xf32>
    %46 = tpu.matmul %43, %45, %cst_25 {dimension_numbers = #tpu.dot_dimension_numbers<[1], [0], [0], [1], [0, 0, 1, 1], [], []>} : vector<16x128xbf16>, vector<128x128xbf16>, vector<16x128xf32> -> vector<16x128xf32>
    %47 = arith.addf %44, %46 : vector<16x128xf32>
    %c0_26 = arith.constant 0 : index
    %c0_27 = arith.constant 0 : index
    %48 = vector.load %arg12[%c0_26, %c0_27] : memref<16x128xf32, #tpu.memory_space<vmem>>, vector<16x128xf32>
    tpu.vector_store %arg12[%c0_26, %c0_27], %47 {strides = array<i32>} : memref<16x128xf32, #tpu.memory_space<vmem>>, vector<16x128xf32>,
    return
  }
  func.func @transform_0(%arg0: i32, %arg1: i32) -> (i32, i32) {
    %c0_i32 = arith.constant 0 : i32
    %c0_i32_0 = arith.constant 0 : i32
    %c0_i32_1 = arith.constant 0 : i32
    return %c0_i32, %c0_i32_0 : i32, i32
  }
  func.func @transform_1(%arg0: i32, %arg1: i32) -> (i32, i32) {
    %c2_i32 = arith.constant 2 : i32
    %0 = arith.muli %arg0, %c2_i32 : i32
    %1 = arith.addi %0, %arg1 : i32
    %c0_i32 = arith.constant 0 : i32
    %c0_i32_0 = arith.constant 0 : i32
    return %1, %c0_i32 : i32, i32
  }
  func.func @transform_2(%arg0: i32, %arg1: i32) -> (i32, i32) {
    %c2_i32 = arith.constant 2 : i32
    %0 = arith.muli %arg0, %c2_i32 : i32
    %1 = arith.addi %0, %arg1 : i32
    %c0_i32 = arith.constant 0 : i32
    %c0_i32_0 = arith.constant 0 : i32
    return %1, %c0_i32 : i32, i32
  }
  func.func @transform_3(%arg0: i32, %arg1: i32) -> (i32, i32) {
    %c2_i32 = arith.constant 2 : i32
    %0 = arith.muli %arg0, %c2_i32 : i32
    %1 = arith.addi %0, %arg1 : i32
    %c0_i32 = arith.constant 0 : i32
    %c0_i32_0 = arith.constant 0 : i32
    return %1, %c0_i32 : i32, i32
  }
  func.func @transform_4(%arg0: i32, %arg1: i32) -> (i32, i32) {
    %c2_i32 = arith.constant 2 : i32
    %0 = arith.muli %arg0, %c2_i32 : i32
    %1 = arith.addi %0, %arg1 : i32
    %c0_i32 = arith.constant 0 : i32
    %c0_i32_0 = arith.constant 0 : i32
    return %c0_i32, %1 : i32, i32
  }
  func.func @transform_5(%arg0: i32, %arg1: i32) -> (i32, i32) {
    %c0_i32 = arith.constant 0 : i32
    %c0_i32_0 = arith.constant 0 : i32
    %c0_i32_1 = arith.constant 0 : i32
    return %c0_i32, %c0_i32_0 : i32, i32
  }
  func.func @transform_6(%arg0: i32, %arg1: i32) -> (i32, i32) {
    %c0_i32 = arith.constant 0 : i32
    %c0_i32_0 = arith.constant 0 : i32
    %c0_i32_1 = arith.constant 0 : i32
    return %c0_i32, %c0_i32_0 : i32, i32
  }
  func.func @transform_7(%arg0: i32, %arg1: i32) -> (i32, i32) {
    %c0_i32 = arith.constant 0 : i32
    %c0_i32_0 = arith.constant 0 : i32
    %c0_i32_1 = arith.constant 0 : i32
    return %c0_i32, %c0_i32_0 : i32, i32
  }
  func.func @transform_8(%arg0: i32, %arg1: i32) -> (i32, i32) {
    %c0_i32 = arith.constant 0 : i32
    %c0_i32_0 = arith.constant 0 : i32
    %c0_i32_1 = arith.constant 0 : i32
    return %c0_i32, %c0_i32_0 : i32, i32
  }
  func.func @transform_9(%arg0: i32, %arg1: i32) -> (i32, i32) {
    %c0_i32 = arith.constant 0 : i32
    %c0_i32_0 = arith.constant 0 : i32
    %c0_i32_1 = arith.constant 0 : i32
    return %c0_i32, %c0_i32_0 : i32, i32
  }
  func.func @transform_10(%arg0: i32, %arg1: i32) -> (i32, i32) {
    %c0_i32 = arith.constant 0 : i32
    %c0_i32_0 = arith.constant 0 : i32
    return %arg0, %c0_i32 : i32, i32
  }
}

</mosaic_0001>

<bundles_post_ra>
// kernel: tpu_custom_call.1
= control target key start
LH: loop header
LB: loop body
LE: loop exit
PB: predicated region body
PF: predicated region fallthrough
CT: control target
= control target key end

     0   :  { %15 = vsyncpa [#allocation4], 0  ;;  %s3183_s0 = inlined_call_operand.vmem [shape: f32[16,128], index: 0, kind: input, shape index: {}]   ;;  %s3184_s1 = inlined_call_operand.vmem [shape: f32[512,16], index: 1, kind: input, shape index: {}]   ;;  %s3185_s2 = inlined_call_operand.vmem [shape: f32[512,1], index: 2, kind: input, shape index: {}]   ;;  %s3186_s3 = inlined_call_operand.vmem [shape: s32[512,1], index: 3, kind: input, shape index: {}]   ;;  %s3187_s4 = inlined_call_operand.vmem [shape: s32[1,512], index: 4, kind: input, shape index: {}]   ;;  %s3188_s5 = inlined_call_operand.vmem [shape: f32[16,128], index: 5, kind: input, shape index: {}]   ;;  %s3189_s6 = inlined_call_operand.vmem [shape: f32[1,128], index: 6, kind: input, shape index: {}]   ;;  %s3190_s7 = inlined_call_operand.vmem [shape: f32[128,128], index: 7, kind: input, shape index: {}]   ;;  %s3191_s8 = inlined_call_operand.vmem [shape: f32[1,128], index: 8, kind: input, shape index: {}]   ;;  %s3192_s9 = inlined_call_operand.vmem [shape: f32[128,128], index: 9, kind: input, shape index: {}]   ;;  %s3193_s10 = inlined_call_operand.hbm [shape: f32[32,128], index: 10, kind: output, shape index: {}]  }
   0x1   :  { %17 = vsyncpa [#allocation4 + $0x1], 0  ;;  %s2502_s13 = smov 0   ;;  %s2504_s14 = smov 0  }
   0x2   :  { %s2506_s15 = smov 0   ;;  %s2508_s16 = smov 0  }
   0x3   :  { %s2510_s17 = smov 0   ;;  %s2512_s18 = smov 0  }
   0x4   :  { %s2514_s19 = smov 0   ;;  %s2516_s20 = smov 0  }
   0x5 LB: > { %3203 = sst [smem:[#allocation6_spill]] %s2409_s13  ;;  %s1794_s21 = sadd.s32 4294967295, %s2437_s20   ;;  %s2437_s20 = sphi %s2516_s20, %s23_s20   ;;  %s2433_s19 = sphi %s2514_s19, %s3237_s19   ;;  %s2429_s18 = sphi %s2512_s18, %s3236_s18   ;;  %s2425_s17 = sphi %s2510_s17, %s3235_s17   ;;  %s2421_s16 = sphi %s2508_s16, %s3234_s16   ;;  %s2417_s15 = sphi %s2506_s15, %s3233_s15   ;;  %s2413_s14 = sphi %s2504_s14, %s3239_s14   ;;  %s2409_s13 = sphi %s2502_s13, %s3238_s13  }
   0x6   : > { %3204 = sst [smem:[#allocation7_spill]] %s2417_s15  ;;  %s1795_s22 = sadd.s32 4294967294, %s2437_s20  }
   0x7   : > { %3205 = sst [smem:[#allocation8_spill]] %s2429_s18  ;;  %s32_s23 = sadd.s32 1, %s2429_s18 }
   0x8   : > { %3206 = sst [smem:[#allocation9_spill]] %s2433_s19  ;;  %p33_p0 = scmp.ge.s32.totalorder %s32_s23, 2 }
   0x9   : > { %3207 = sst [smem:[#allocation10_spill]] %s2437_s20  ;;  %s35_s24 = sadd.s32 1, %s2433_s19 }
   0xa   : > { %p298_p1 = scmp.ne.s32.totalorder %s2417_s15, %s2413_s14  ;;  %p299_p2 = scmp.eq.s32.totalorder %s1794_s21, 3 }
   0xb   : > { %s3241_s23 = smov (%p33_p0, %s32_s23), 0  ;;  %s3243_s24 = smov (!%p33_p0, %s35_s24), %s2433_s19 }
   0xc   : > { %3208 = sst [smem:[#allocation11_spill]] %s3241_s23  ;;  %p2551_p3 = por %p299_p2, %p298_p1 }
   0xd   : > { %p304_p4 = scmp.ne.s32.totalorder %s2413_s14, %s2409_s13  ;;  %p37_p5 = scmp.ge.s32.totalorder %s3243_s24, 2 }
   0xe   : > { %p305_p6 = scmp.eq.s32.totalorder %s1795_s22, 3  ;;  %p1806_p7 = scmp.ge.s32.totalorder %s2437_s20, 1 }
   0xf   : > { %p390_p8 = scmp.lt.s32.totalorder %s2437_s20, 5  ;;  %s3245_s24 = smov (%p37_p5, %s3243_s24), 0 }
  0x10   : > { %3210 = sst [smem:[#allocation12_spill]] %s3245_s24  ;;  %p2561_p9 = por %p305_p6, %p304_p4 }
  0x11   : > { %p391_p10 = pnand %p1806_p7, %p390_p8  ;;  %s285_s27 = ssub.s32 %s2433_s19, %s3245_s24 }
  0x12   : > { %s3211_s26 = scalar_select %p2561_p9, 1, 0 }
  0x13   : > { %s288_s28 = sadd.s32 1, %s2417_s15  ;;  %p286_p11 = scmp.eq.s32.totalorder %s285_s27, 0 }
  0x14   : > { %3212 = sst [smem:[#allocation13_spill]] %s3211_s26  ;;  %394 = sbr.rel (%p391_p10) target bundleno = 1037 (0x40d), region = 60 }
  0x15   : > { %s2569_s29 = scalar_select %p286_p11, %s2417_s15, %s288_s28  }
  0x16   : > { %s3197_s30 = sand.u32 (!%p391_p10), 1, %s2413_s14   ;;  %s1808_s11 = sshll.u32 (!%p391_p10), %s2425_s17, 1 }
  0x17   : > { %3213 = sst [smem:[#allocation14_spill]] %s2569_s29  ;;  %s1807_s12 = sshll.u32 (!%p391_p10), %s3197_s30, 4 }
  0x18   : > { %s450_s21 = sadd.s32 (!%p391_p10), %s2421_s16, %s1808_s11  ;;  %p1818_p0 = scmp.ne.s32.totalorder (!%p391_p10), %s2421_s16, 0 }
  0x19   : > { %s1809_s22 = sshll.u32 (!%p391_p10), %s450_s21, 4  ;;  %p481_p13 = scmp.lt.s32.totalorder (!%p391_p10), %s450_s21, 3 }
  0x1a   : > { %p452_p12 = scmp.lt.s32.totalorder (!%p391_p10), %s1809_s22, 63 }
  0x1b   : > { %s3249_s21 = smov (!%p481_p13, %s450_s21), 3  ;;  %491 = sbr.rel (%p1818_p0) target bundleno = 279 (0x117), region = 64 }
  0x1c   : > { %s3247_s22 = smov (!%p452_p12, %s1809_s22), 63  ;;  %s483_s20 = scalar_lea.vmem %s3187_s4, %s3249_s21  ;;  %v494_v0 = vld [vmem:[%s3192_s9] sm:$0xff] (!%p1818_p0)  ;;  %v495_v1 = vld [vmem:[%s3192_s9 + $0x8] sm:$0xff] (!%p1818_p0)  ;;  %v496_v2 = vld [vmem:[%s3192_s9 + $0x10] sm:$0xff] (!%p1818_p0)  ;;  %v2439_v26 = vmov (!%p1818_p0), 0.0  }
  0x1d   : > { %s1810_s27 = sshll.u32 %s3247_s22, 3  ;;  %s2597_s22 = scalar_lea.vmem [#allocation3], %s1807_s12  ;;  %v2131_v3 = vpack.c.bf16 (!%p1818_p0), %v495_v1, %v494_v0  ;;  %v497_v4 = vld [vmem:[%s3192_s9 + $0x18] sm:$0xff] (!%p1818_p0)  ;;  %v498_v6 = vld [vmem:[%s3192_s9 + $0x20] sm:$0xff] (!%p1818_p0)  ;;  %v499_v7 = vld [vmem:[%s3192_s9 + $0x28] sm:$0xff] (!%p1818_p0) }
  0x1e   : > { %s2581_s23 = scalar_lea.vmem %s3184_s1, %s1810_s27  ;;  %s2586_s29 = scalar_lea.vmem %s3185_s2, %s1810_s27  ;;  %v2135_v5 = vpack.c.bf16 (!%p1818_p0), %v497_v4, %v496_v2  ;;  %v2139_v8 = vpack.c.bf16 (!%p1818_p0), %v499_v7, %v498_v6  ;;  %v492_v9 = vld [vmem:[%s3183_s0] sm:$0xff] (!%p1818_p0)  ;;  %v500_v10 = vld [vmem:[%s3192_s9 + $0x30] sm:$0xff] (!%p1818_p0)  ;;  %v501_v11 = vld [vmem:[%s3192_s9 + $0x38] sm:$0xff] (!%p1818_p0)  ;;  %587 = vst [vmem:[%s2597_s22] sm:$0xff] (!%p1818_p0), %v2439_v26 }
  0x1f   : > { %s2591_s15 = scalar_lea.vmem %s3186_s3, %s1810_s27  ;;  %2132 = vmatprep.subr.bf16.mxu0 (!%p1818_p0), %v2131_v3  ;;  %2006 = vmatprep.mubr.f32.mxu0 (!%p1818_p0), %v492_v9  ;;  %v2143_v12 = vpack.c.bf16 (!%p1818_p0), %v501_v11, %v500_v10  ;;  %v502_v13 = vld [vmem:[%s3192_s9 + $0x40] sm:$0xff] (!%p1818_p0)  ;;  %v503_v14 = vld [vmem:[%s3192_s9 + $0x48] sm:$0xff] (!%p1818_p0)  ;;  %v504_v16 = vld [vmem:[%s3192_s9 + $0x50] sm:$0xff] (!%p1818_p0)  ;;  %588 = vst [vmem:[%s2597_s22 + $0x8] sm:$0xff] (!%p1818_p0), %v2439_v26 }
  0x20   : > { %2134 = vmatpush3.bf16.msra.mxu0 (!%p1818_p0), %v2131_v3  ;;  %v2147_v15 = vpack.c.bf16 (!%p1818_p0), %v503_v14, %v502_v13  ;;  %v505_v17 = vld [vmem:[%s3192_s9 + $0x58] sm:$0xff] (!%p1818_p0)  ;;  %v506_v19 = vld [vmem:[%s3192_s9 + $0x60] sm:$0xff] (!%p1818_p0)  ;;  %v507_v20 = vld [vmem:[%s3192_s9 + $0x68] sm:$0xff] (!%p1818_p0) }
  0x21   : > { %2136 = vmatprep.subr.bf16.mxu0 (!%p1818_p0), %v2135_v5  ;;  %v2151_v18 = vpack.c.bf16 (!%p1818_p0), %v505_v17, %v504_v16  ;;  %v2155_v21 = vpack.c.bf16 (!%p1818_p0), %v507_v20, %v506_v19  ;;  %v508_v22 = vld [vmem:[%s3192_s9 + $0x70] sm:$0xff] (!%p1818_p0)  ;;  %v509_v23 = vld [vmem:[%s3192_s9 + $0x78] sm:$0xff] (!%p1818_p0)  ;;  %v493_v25 = vld [vmem:[%s3183_s0 + $0x8] sm:$0xff] (!%p1818_p0) }
  0x22   : > { %v2159_v24 = vpack.c.bf16 %v509_v23, %v508_v22 }
  0x24   : > { %2138 = vmatpush3.bf16.msra.mxu0 %v2135_v5 }
  0x25   : > { %2140 = vmatprep.subr.bf16.mxu0 %v2139_v8 }
  0x28   : > { %2142 = vmatpush3.bf16.msra.mxu0 %v2139_v8 }
  0x29   : > { %2144 = vmatprep.subr.bf16.mxu0 %v2143_v12 }
  0x2c   : > { %2146 = vmatpush3.bf16.msra.mxu0 %v2143_v12 }
  0x2d   : > { %2148 = vmatprep.subr.bf16.mxu0 %v2147_v15 }
  0x30   : > { %2150 = vmatpush3.bf16.msra.mxu0 %v2147_v15 }
  0x31   : > { %2152 = vmatprep.subr.bf16.mxu0 %v2151_v18 }
  0x34   : > { %2154 = vmatpush3.bf16.msra.mxu0 %v2151_v18 }
  0x35   : > { %2156 = vmatprep.subr.bf16.mxu0 %v2155_v21 }
  0x38   : > { %2158 = vmatpush3.bf16.msra.mxu0 %v2155_v21 }
  0x39   : > { %2160 = vmatprep.subr.bf16.mxu0 %v2159_v24 }
  0x3c   : > { %2162 = vmatpush3.bf16.msra.mxu0 %v2159_v24 }
  0x3f   : > { %2007 = vmatmul.mubr.f32.vlgmr.msra.gmra.mrb[0].mxu0 %v493_v25 }
 0x112   : > { %v2008_v27 = vpop.f32.mrb[0].mxu0 }
 0x113   : > { %v576_v28 = vpop.f32.mrb[1].mxu0 }
 0x114   : > { %v585_v29 = vpack.c.bf16 %v2008_v27, %v576_v28 }
 0x116   : > { %586 = vst [vmem:[#allocation2] sm:$0xff] %v585_v29 }
 0x117 PF: > { %v605_v30 = vld [vmem:[%s3188_s5] sm:$0xff]  ;;  %v606_v31 = vld [vmem:[%s3188_s5 + $0x8] sm:$0xff]  ;;  %vm614_vm0 = vcmask 130048   ;;  %v2440_v34 = vmov 0   ;;  %v591_v36 = vld [vmem:[%s2581_s23 + $0x10] sm:$0xff]  ;;  %s1887_s21 = sshll.u32 %s2425_s17, 8 }
 0x118   : > { %v589_v32 = vld [vmem:[%s2581_s23] sm:$0xff]  ;;  %v2163_v33 = vpack.c.bf16 %v606_v31, %v605_v30  ;;  %2277 = vset.pattern.permute.xlu0 %v2440_v34  ;;  %2278 = vset.pattern.permute.xlu1 %v2440_v34  ;;  %v590_v35 = vld [vmem:[%s2581_s23 + $0x8] sm:$0xff]  ;;  %v1348_v38 = vld [vmem:[%s2591_s15 + $0x10] sm:$0xff]  ;;  %s3123_s27 = scalar_lea.hbm %s3193_s10, %s1887_s21  ;;  %s3228_s17 = sand.u32 1, %s2413_s14  }
 0x119   : > { %2013 = vmatprep.mubr.msk.f32.mxu0 %vm614_vm0, %v589_v32  ;;  %v1346_v37 = vld [vmem:[%s2591_s15] sm:$0xff]  ;;  %v592_v39 = vld [vmem:[%s2581_s23 + $0x18] sm:$0xff]  ;;  %1369 = vperm.xlu1 %2278, %v1348_v38   ;;  %v1347_v40 = vld [vmem:[%s2591_s15 + $0x8] sm:$0xff]  ;;  %s3131_s13 = scalar_lea.sflag [#allocation4], %s3228_s17 }
 0x11a   : > { %2164 = vmatprep.subr.bf16.mxu0 %v2163_v33  ;;  %1363 = vperm.xlu0 %2277, %v1346_v37   ;;  %v593_v41 = vld [vmem:[%s2581_s23 + $0x20] sm:$0xff]  ;;  %v1349_v42 = vld [vmem:[%s2591_s15 + $0x18] sm:$0xff]  ;;  %v594_v43 = vld [vmem:[%s2581_s23 + $0x28] sm:$0xff] }
 0x11b   : > { %2166 = vmatpush3.bf16.msra.mxu0 %v2163_v33  ;;  %v1350_v44 = vld [vmem:[%s2591_s15 + $0x20] sm:$0xff]  ;;  %v595_v45 = vld [vmem:[%s2581_s23 + $0x30] sm:$0xff]  ;;  %v1351_v46 = vld [vmem:[%s2591_s15 + $0x28] sm:$0xff] }
 0x11c   : > { %v596_v47 = vld [vmem:[%s2581_s23 + $0x38] sm:$0xff]  ;;  %v1352_v48 = vld [vmem:[%s2591_s15 + $0x30] sm:$0xff]  ;;  %v597_v49 = vld [vmem:[%s2581_s23 + $0x40] sm:$0xff] }
 0x11d   : > { %1372 = vperm.xlu1 %2278, %v1349_v42   ;;  %v1353_v50 = vld [vmem:[%s2591_s15 + $0x38] sm:$0xff]  ;;  %v598_v51 = vld [vmem:[%s2581_s23 + $0x48] sm:$0xff]  ;;  %v1354_v52 = vld [vmem:[%s2591_s15 + $0x40] sm:$0xff] }
 0x11e   : > { %2014 = vmatmul.mubr.msk.f32.vlgmr.msra.gmra.mrb[0].mxu0 %vm614_vm0, %v590_v35  ;;  %1366 = vperm.xlu0 %2277, %v1347_v40   ;;  %v599_v53 = vld [vmem:[%s2581_s23 + $0x50] sm:$0xff]  ;;  %v1355_v54 = vld [vmem:[%s2591_s15 + $0x48] sm:$0xff]  ;;  %v600_v55 = vld [vmem:[%s2581_s23 + $0x58] sm:$0xff] }
 0x11f   : > { %2016 = vmatprep.mubr.msk.f32.mxu0 %vm614_vm0, %v591_v36  ;;  %v1356_v56 = vld [vmem:[%s2591_s15 + $0x50] sm:$0xff]  ;;  %v601_v57 = vld [vmem:[%s2581_s23 + $0x60] sm:$0xff]  ;;  %v1357_v58 = vld [vmem:[%s2591_s15 + $0x58] sm:$0xff] }
 0x120   : > { %v602_v59 = vld [vmem:[%s2581_s23 + $0x68] sm:$0xff]  ;;  %v1358_v60 = vld [vmem:[%s2591_s15 + $0x60] sm:$0xff]  ;;  %v603_v61 = vld [vmem:[%s2581_s23 + $0x70] sm:$0xff] }
 0x121   : > { %1378 = vperm.xlu1 %2278, %v1351_v46   ;;  %v1359_v62 = vld [vmem:[%s2591_s15 + $0x68] sm:$0xff]  ;;  %v604_v63 = vld [vmem:[%s2581_s23 + $0x78] sm:$0xff]  ;;  %v1360_v0 = vld [vmem:[%s2591_s15 + $0x70] sm:$0xff]  ;;  %s2444_s23 = smov [#allocation3]  }
 0x122   : > { %2017 = vmatmul.mubr.msk.f32.gmra.mrb[2].mxu0 %vm614_vm0, %v592_v39  ;;  %1375 = vperm.xlu0 %2277, %v1350_v44   ;;  %v1361_v1 = vld [vmem:[%s2591_s15 + $0x78] sm:$0xff]  ;;  %v1232_v2 = vld [vmem:[%s2586_s29] sm:$0xff]  ;;  %v1233_v3 = vld [vmem:[%s2586_s29 + $0x8] sm:$0xff]  ;;  %v2441_v44 = vmov 0.0   ;;  %s2347_s26 = sshll.u32 %s2444_s23, 4  ;;  %s2348_s26 = int_to_ptr.vmem [resolvable:$false] %s2347_s26 }
 0x123   : > { %2019 = vmatprep.mubr.msk.f32.mxu0 %vm614_vm0, %v593_v41  ;;  %v1234_v4 = vld [vmem:[%s2586_s29 + $0x10] sm:$0xff]  ;;  %v1235_v5 = vld [vmem:[%s2586_s29 + $0x18] sm:$0xff]  ;;  %v1236_v6 = vld [vmem:[%s2586_s29 + $0x20] sm:$0xff]  ;;  %s2349_s16 = scalar_lea.vmem %s2348_s26, 512 }
 0x124   : > { %v1237_v7 = vld [vmem:[%s2586_s29 + $0x28] sm:$0xff]  ;;  %v1238_v8 = vld [vmem:[%s2586_s29 + $0x30] sm:$0xff]  ;;  %v1239_v9 = vld [vmem:[%s2586_s29 + $0x38] sm:$0xff] }
 0x125   : > { %1384 = vperm.xlu1 %2278, %v1353_v50   ;;  %v1240_v10 = vld [vmem:[%s2586_s29 + $0x40] sm:$0xff]  ;;  %v1241_v11 = vld [vmem:[%s2586_s29 + $0x48] sm:$0xff]  ;;  %v1242_v12 = vld [vmem:[%s2586_s29 + $0x50] sm:$0xff] }
 0x126   : > { %2020 = vmatmul.mubr.msk.f32.gmra.mrb[4].mxu0 %vm614_vm0, %v594_v43  ;;  %1381 = vperm.xlu0 %2277, %v1352_v48   ;;  %v1243_v13 = vld [vmem:[%s2586_s29 + $0x58] sm:$0xff]  ;;  %v1244_v14 = vld [vmem:[%s2586_s29 + $0x60] sm:$0xff]  ;;  %v1245_v15 = vld [vmem:[%s2586_s29 + $0x68] sm:$0xff]  ;;  %v1344_v43 = vlaneseq }
 0x127   : > { %2022 = vmatprep.mubr.msk.f32.mxu0 %vm614_vm0, %v595_v45  ;;  %v1246_v16 = vld [vmem:[%s2586_s29 + $0x70] sm:$0xff]  ;;  %v1247_v17 = vld [vmem:[%s2586_s29 + $0x78] sm:$0xff]  ;;  %v1466_v18 = vld [vmem:[#allocation2] sm:$0xff] }
 0x128   : > { %v1064_v19 = vld [vmem:[%s3190_s7] sm:$0xff]  ;;  %v1065_v20 = vld [vmem:[%s3190_s7 + $0x8] sm:$0xff]  ;;  %2093 = vmatprep.subr.bf16.mxu0 %v1466_v18  ;;  %v1066_v22 = vld [vmem:[%s3190_s7 + $0x10] sm:$0xff]  ;;  %v2776_v45 = vand.u32 127, %v1344_v43 }
 0x129   : > { %1390 = vperm.xlu1 %2278, %v1355_v54   ;;  %v2167_v21 = vpack.c.bf16 %v1065_v20, %v1064_v19  ;;  %2094 = vmatpush3.bf16.msra.mxu0 %v1466_v18  ;;  %v1067_v23 = vld [vmem:[%s3190_s7 + $0x18] sm:$0xff]  ;;  %v1068_v25 = vld [vmem:[%s3190_s7 + $0x20] sm:$0xff]  ;;  %v1069_v26 = vld [vmem:[%s3190_s7 + $0x28] sm:$0xff] }
 0x12a   : > { %2023 = vmatmul.mubr.msk.f32.gmra.mrb[6].mxu0 %vm614_vm0, %v596_v47  ;;  %1387 = vperm.xlu0 %2277, %v1354_v52   ;;  %v2171_v24 = vpack.c.bf16 %v1067_v23, %v1066_v22  ;;  %v2175_v27 = vpack.c.bf16 %v1069_v26, %v1068_v25  ;;  %v1070_v28 = vld [vmem:[%s3190_s7 + $0x30] sm:$0xff]  ;;  %v1071_v29 = vld [vmem:[%s3190_s7 + $0x38] sm:$0xff]  ;;  %v1072_v31 = vld [vmem:[%s3190_s7 + $0x40] sm:$0xff] }
 0x12b   : > { %2025 = vmatprep.mubr.msk.f32.mxu0 %vm614_vm0, %v597_v49  ;;  %2168 = vmatprep.subr.bf16.mxu1 %v2167_v21  ;;  %v2179_v30 = vpack.c.bf16 %v1071_v29, %v1070_v28  ;;  %v1073_v32 = vld [vmem:[%s3190_s7 + $0x48] sm:$0xff]  ;;  %v1074_v34 = vld [vmem:[%s3190_s7 + $0x50] sm:$0xff]  ;;  %v1075_v35 = vld [vmem:[%s3190_s7 + $0x58] sm:$0xff] }
 0x12c   : > { %2170 = vmatpush3.bf16.msra.mxu1 %v2167_v21  ;;  %v2183_v33 = vpack.c.bf16 %v1073_v32, %v1072_v31  ;;  %v2187_v36 = vpack.c.bf16 %v1075_v35, %v1074_v34  ;;  %v1076_v37 = vld [vmem:[%s3190_s7 + $0x60] sm:$0xff]  ;;  %v1077_v38 = vld [vmem:[%s3190_s7 + $0x68] sm:$0xff]  ;;  %v1078_v40 = vld [vmem:[%s3190_s7 + $0x70] sm:$0xff] }
 0x12d   : > { %1396 = vperm.xlu1 %2278, %v1357_v58   ;;  %2172 = vmatprep.subr.bf16.mxu1 %v2171_v24  ;;  %v2191_v39 = vpack.c.bf16 %v1077_v38, %v1076_v37  ;;  %v1079_v41 = vld [vmem:[%s3190_s7 + $0x78] sm:$0xff]  ;;  %v2821_v22 = vld [vmem:[%s3189_s6] ss:$0 sm:$0xff] }
 0x12e   : > { %2026 = vmatmul.mubr.msk.f32.gmra.mrb[8].mxu0 %vm614_vm0, %v598_v51  ;;  %1393 = vperm.xlu0 %2277, %v1356_v56   ;;  %v2195_v42 = vpack.c.bf16 %v1079_v41, %v1078_v40 }
 0x12f   : > { %2028 = vmatprep.mubr.msk.f32.mxu0 %vm614_vm0, %v599_v53 }
 0x130   : > { %2174 = vmatpush3.bf16.msra.mxu1 %v2171_v24 }
 0x131   : > { %1402 = vperm.xlu1 %2278, %v1359_v62   ;;  %2176 = vmatprep.subr.bf16.mxu1 %v2175_v27 }
 0x132   : > { %2029 = vmatmul.mubr.msk.f32.gmra.mrb[10].mxu0 %vm614_vm0, %v600_v55  ;;  %1399 = vperm.xlu0 %2277, %v1358_v60  }
 0x133   : > { %2031 = vmatprep.mubr.msk.f32.mxu0 %vm614_vm0, %v601_v57 }
 0x134   : > { %2178 = vmatpush3.bf16.msra.mxu1 %v2175_v27 }
 0x135   : > { %1408 = vperm.xlu1 %2278, %v1361_v1   ;;  %2180 = vmatprep.subr.bf16.mxu1 %v2179_v30 }
 0x136   : > { %2032 = vmatmul.mubr.msk.f32.gmra.mrb[12].mxu0 %vm614_vm0, %v602_v59  ;;  %1405 = vperm.xlu0 %2277, %v1360_v0  }
 0x137   : > { %2034 = vmatprep.mubr.msk.f32.mxu0 %vm614_vm0, %v603_v61 }
 0x138   : > { %2182 = vmatpush3.bf16.msra.mxu1 %v2179_v30 }
 0x139   : > { %1255 = vperm.xlu1 %2278, %v1233_v3   ;;  %2184 = vmatprep.subr.bf16.mxu1 %v2183_v33 }
 0x13a   : > { %2035 = vmatmul.mubr.msk.f32.gmra.mrb[14].mxu0 %vm614_vm0, %v604_v63  ;;  %1250 = vperm.xlu0 %2277, %v1232_v2  }
 0x13c   : > { %2186 = vmatpush3.bf16.msra.mxu1 %v2183_v33 }
 0x13d   : > { %1265 = vperm.xlu1 %2278, %v1235_v5   ;;  %2188 = vmatprep.subr.bf16.mxu1 %v2187_v36 }
 0x13e   : > { %1260 = vperm.xlu0 %2277, %v1234_v4  }
 0x140   : > { %2190 = vmatpush3.bf16.msra.mxu1 %v2187_v36 }
 0x141   : > { %1275 = vperm.xlu1 %2278, %v1237_v7   ;;  %2192 = vmatprep.subr.bf16.mxu1 %v2191_v39 }
 0x142   : > { %1270 = vperm.xlu0 %2277, %v1236_v6  }
 0x144   : > { %2194 = vmatpush3.bf16.msra.mxu1 %v2191_v39 }
 0x145   : > { %1285 = vperm.xlu1 %2278, %v1239_v9   ;;  %2196 = vmatprep.subr.bf16.mxu1 %v2195_v42 }
 0x146   : > { %1280 = vperm.xlu0 %2277, %v1238_v8  }
 0x148   : > { %2198 = vmatpush3.bf16.msra.mxu1 %v2195_v42 }
 0x149   : > { %1295 = vperm.xlu1 %2278, %v1241_v11   ;;  %2111 = vmatprep.subr.bf16.mxu1 %v2441_v44 }
 0x14a   : > { %1290 = vperm.xlu0 %2277, %v1240_v10  }
 0x14d   : > { %1305 = vperm.xlu1 %2278, %v1243_v13  }
 0x14e   : > { %1300 = vperm.xlu0 %2277, %v1242_v12  }
 0x151   : > { %1315 = vperm.xlu1 %2278, %v1245_v15  }
 0x152   : > { %1310 = vperm.xlu0 %2277, %v1244_v14  }
 0x155   : > { %1325 = vperm.xlu1 %2278, %v1247_v17  }
 0x156   : > { %1320 = vperm.xlu0 %2277, %v1246_v16  }
 0x198   : > { %v1370_v47 = vpop.permute.xlu1 %1369 }
 0x199   : > { %v1364_v46 = vpop.permute.xlu0 %1363  ;;  %vm1412_vm2 = vcmp.eq.s32.totalorder %v2776_v45, %v1370_v47 }
 0x19a   : > { %vm1410_vm1 = vcmp.eq.s32.totalorder %v2776_v45, %v1364_v46  ;;  %v1855_v50 = vsel %vm1412_vm2, 1.0, %v2441_v44 }
 0x19b   : > { %v1853_v48 = vsel %vm1410_vm1, 1.0, %v2441_v44 }
 0x19c   : > { %v1373_v51 = vpop.permute.xlu1 %1372 }
 0x19d   : > { %v1367_v49 = vpop.permute.xlu0 %1366  ;;  %vm1413_vm4 = vcmp.eq.s32.totalorder %v2776_v45, %v1373_v51 }
 0x19e   : > { %vm1411_vm3 = vcmp.eq.s32.totalorder %v2776_v45, %v1367_v49  ;;  %v1856_v54 = vsel %vm1413_vm4, 1.0, %v2441_v44 }
 0x19f   : > { %v1854_v52 = vsel %vm1411_vm3, 1.0, %v2441_v44  ;;  %v1459_v55 = vpack.c.bf16 %v1856_v54, %v1855_v50 }
 0x1a0   : > { %v1458_v53 = vpack.c.bf16 %v1854_v52, %v1853_v48  ;;  %v1379_v57 = vpop.permute.xlu1 %1378 }
 0x1a1   : > { %v1376_v56 = vpop.permute.xlu0 %1375  ;;  %vm1415_vm6 = vcmp.eq.s32.totalorder %v2776_v45, %v1379_v57 }
 0x1a2   : > { %vm1414_vm5 = vcmp.eq.s32.totalorder %v2776_v45, %v1376_v56  ;;  %2095 = vmatprep.mubr.msk.bf16.mxu0 %vm614_vm0, %v1458_v53  ;;  %v1858_v59 = vsel %vm1415_vm6, 1.0, %v2441_v44 }
 0x1a3   : > { %v1857_v58 = vsel %vm1414_vm5, 1.0, %v2441_v44  ;;  %2096 = vmatmul.mubr.msk.bf16.vlgmr.msra.gmra.mrb[16].mxu0 %vm614_vm0, %v1459_v55 }
 0x1a4   : > { %v1460_v60 = vpack.c.bf16 %v1858_v59, %v1857_v58  ;;  %v1385_v62 = vpop.permute.xlu1 %1384 }
 0x1a5   : > { %v1382_v61 = vpop.permute.xlu0 %1381  ;;  %vm1417_vm8 = vcmp.eq.s32.totalorder %v2776_v45, %v1385_v62 }
 0x1a6   : > { %vm1416_vm7 = vcmp.eq.s32.totalorder %v2776_v45, %v1382_v61  ;;  %2099 = vmatprep.mubr.msk.bf16.mxu0 %vm614_vm0, %v1460_v60  ;;  %v1860_v0 = vsel %vm1417_vm8, 1.0, %v2441_v44 }
 0x1a7   : > { %v1859_v63 = vsel %vm1416_vm7, 1.0, %v2441_v44 }
 0x1a8   : > { %v1461_v1 = vpack.c.bf16 %v1860_v0, %v1859_v63  ;;  %v1391_v3 = vpop.permute.xlu1 %1390 }
 0x1a9   : > { %v1388_v2 = vpop.permute.xlu0 %1387  ;;  %vm1419_vm10 = vcmp.eq.s32.totalorder %v2776_v45, %v1391_v3 }
 0x1aa   : > { %vm1418_vm9 = vcmp.eq.s32.totalorder %v2776_v45, %v1388_v2  ;;  %v1862_v5 = vsel %vm1419_vm10, 1.0, %v2441_v44 }
 0x1ab   : > { %v1861_v4 = vsel %vm1418_vm9, 1.0, %v2441_v44  ;;  %2100 = vmatmul.mubr.msk.bf16.gmra.mrb[20].mxu0 %vm614_vm0, %v1461_v1 }
 0x1ac   : > { %v1462_v6 = vpack.c.bf16 %v1862_v5, %v1861_v4  ;;  %v1397_v8 = vpop.permute.xlu1 %1396 }
 0x1ad   : > { %v1394_v7 = vpop.permute.xlu0 %1393  ;;  %vm1421_vm12 = vcmp.eq.s32.totalorder %v2776_v45, %v1397_v8 }
 0x1ae   : > { %vm1420_vm11 = vcmp.eq.s32.totalorder %v2776_v45, %v1394_v7  ;;  %2103 = vmatprep.mubr.msk.bf16.mxu0 %vm614_vm0, %v1462_v6  ;;  %v1864_v10 = vsel %vm1421_vm12, 1.0, %v2441_v44 }
 0x1af   : > { %v1863_v9 = vsel %vm1420_vm11, 1.0, %v2441_v44 }
 0x1b0   : > { %v1463_v11 = vpack.c.bf16 %v1864_v10, %v1863_v9  ;;  %v1403_v13 = vpop.permute.xlu1 %1402 }
 0x1b1   : > { %v1400_v12 = vpop.permute.xlu0 %1399  ;;  %vm1423_vm14 = vcmp.eq.s32.totalorder %v2776_v45, %v1403_v13 }
 0x1b2   : > { %vm1422_vm13 = vcmp.eq.s32.totalorder %v2776_v45, %v1400_v12  ;;  %v1866_v15 = vsel %vm1423_vm14, 1.0, %v2441_v44 }
 0x1b3   : > { %v1865_v14 = vsel %vm1422_vm13, 1.0, %v2441_v44  ;;  %2104 = vmatmul.mubr.msk.bf16.gmra.mrb[24].mxu0 %vm614_vm0, %v1463_v11 }
 0x1b4   : > { %v1464_v16 = vpack.c.bf16 %v1866_v15, %v1865_v14  ;;  %v1409_v18 = vpop.permute.xlu1 %1408 }
 0x1b5   : > { %v1406_v17 = vpop.permute.xlu0 %1405  ;;  %vm1425_vm1 = vcmp.eq.s32.totalorder %v2776_v45, %v1409_v18 }
 0x1b6   : > { %vm1424_vm15 = vcmp.eq.s32.totalorder %v2776_v45, %v1406_v17  ;;  %2107 = vmatprep.mubr.msk.bf16.mxu0 %vm614_vm0, %v1464_v16  ;;  %v1868_v20 = vsel %vm1425_vm1, 1.0, %v2441_v44 }
 0x1b7   : > { %v1867_v19 = vsel %vm1424_vm15, 1.0, %v2441_v44 }
 0x1b8   : > { %v1465_v21 = vpack.c.bf16 %v1868_v20, %v1867_v19 }
 0x1bb   : > { %2108 = vmatmul.mubr.msk.bf16.gmra.mrb[28].mxu0 %vm614_vm0, %v1465_v21 }
 0x1f1   : > { %v2015_v23 = vpop.f32.mrb[0].mxu0 }
 0x1f2   : > { %v2824_v24 = vadd.f32 %v2015_v23, %v2821_v22  ;;  %v729_v25 = vpop.f32.mrb[1].mxu0 }
 0x1f3   : > { %v2827_v26 = vadd.f32 %v2821_v22, %v729_v25 }
 0x1f4   : > { %v825_v29 = vand.u32 2147483647, %v2824_v24  ;;  %v809_v10 = vmax.f32 %v2824_v24, 0.0 }
 0x1f5   : > { %v824_v27 = vand.u32 2147483647, %v2827_v26  ;;  %v2018_v28 = vpop.f32.mrb[2].mxu0 }
 0x1f6   : > { %v739_v30 = vpop.f32.mrb[3].mxu0  ;;  %v2835_v34 = vadd.f32 %v2018_v28, %v2821_v22  ;;  %v841_v37 = vsub.f32 0.0, %v825_v29  ;;  %v808_v29 = vmax.f32 %v2827_v26, 0.0 }
 0x1f7   : > { %v840_v31 = vsub.f32 0.0, %v824_v27  ;;  %v2832_v32 = vadd.f32 %v2821_v22, %v739_v30 }
 0x1f8   : > { %v827_v41 = vand.u32 2147483647, %v2835_v34  ;;  %v858_v46 = vmul.f32 1.442695, %v841_v37 }
 0x1f9   : > { %v856_v33 = vmul.f32 1.442695, %v840_v31  ;;  %v826_v35 = vand.u32 2147483647, %v2832_v32  ;;  %v2021_v36 = vpop.f32.mrb[4].mxu0  ;;  %v811_v31 = vmax.f32 %v2835_v34, 0.0 }
 0x1fa   : > { %v2839_v38 = vadd.f32 %v2021_v36, %v2821_v22  ;;  %v749_v39 = vpop.f32.mrb[5].mxu0  ;;  %v843_v53 = vsub.f32 0.0, %v827_v41  ;;  %v810_v36 = vmax.f32 %v2832_v32, 0.0 }
 0x1fb   : > { %2279 = vpow2.f32 %v856_v33  ;;  %v2842_v40 = vadd.f32 %v2821_v22, %v749_v39  ;;  %v842_v42 = vsub.f32 0.0, %v826_v35 }
 0x1fc   : > { %v829_v47 = vand.u32 2147483647, %v2839_v38  ;;  %2281 = vpow2.f32 %v858_v46  ;;  %v862_v1 = vmul.f32 1.442695, %v843_v53 }
 0x1fd   : > { %v2024_v45 = vpop.f32.mrb[6].mxu0  ;;  %v828_v50 = vand.u32 2147483647, %v2842_v40  ;;  %v860_v54 = vmul.f32 1.442695, %v842_v42 }
 0x1fe   : > { %v2847_v48 = vadd.f32 %v2024_v45, %v2821_v22  ;;  %v759_v49 = vpop.f32.mrb[7].mxu0  ;;  %v845_v57 = vsub.f32 0.0, %v829_v47 }
 0x1ff   : > { %v2851_v51 = vadd.f32 %v2821_v22, %v759_v49  ;;  %v844_v60 = vsub.f32 0.0, %v828_v50  ;;  %2283 = vpow2.f32 %v860_v54 }
 0x200   : > { %v831_v52 = vand.u32 2147483647, %v2847_v48  ;;  %v866_v5 = vmul.f32 1.442695, %v845_v57  ;;  %v813_v57 = vmax.f32 %v2839_v38, 0.0 }
 0x201   : > { %v830_v55 = vand.u32 2147483647, %v2851_v51  ;;  %v2027_v56 = vpop.f32.mrb[8].mxu0  ;;  %v864_v11 = vmul.f32 1.442695, %v844_v60 }
 0x202   : > { %v2856_v58 = vadd.f32 %v2027_v56, %v2821_v22  ;;  %v769_v59 = vpop.f32.mrb[9].mxu0  ;;  %v847_v62 = vsub.f32 0.0, %v831_v52 }
 0x203   : > { %v2859_v61 = vadd.f32 %v2821_v22, %v769_v59  ;;  %v846_v2 = vsub.f32 0.0, %v830_v55 }
 0x204   : > { %v833_v63 = vand.u32 2147483647, %v2856_v58  ;;  %v870_v13 = vmul.f32 1.442695, %v847_v62 }
 0x205   : > { %v2862_v0 = vpop.eup %2279  ;;  %v832_v3 = vand.u32 2147483647, %v2859_v61  ;;  %v2030_v4 = vpop.f32.mrb[10].mxu0  ;;  %v868_v16 = vmul.f32 1.442695, %v846_v2 }
 0x206   : > { %v849_v6 = vsub.f32 0.0, %v833_v63  ;;  %v2866_v7 = vadd.f32 %v2030_v4, %v2821_v22  ;;  %v779_v8 = vpop.f32.mrb[11].mxu0  ;;  %v888_v9 = vadd.f32 1.0, %v2862_v0  ;;  %v891_v19 = vmul.f32 -0.5, %v2862_v0  ;;  %v2883_v30 = vpop.eup %2281 }
 0x207   : > { %v2871_v12 = vadd.f32 %v2821_v22, %v779_v8  ;;  %v848_v14 = vsub.f32 0.0, %v832_v3  ;;  %v897_v53 = vadd.f32 1.0, %v2883_v30  ;;  %v894_v56 = vand.u32 2147483647, %v2862_v0 }
 0x208   : > { %v835_v15 = vand.u32 2147483647, %v2866_v7  ;;  %2285 = vlog2.f32 %v888_v9  ;;  %v874_v20 = vmul.f32 1.442695, %v849_v6  ;;  %v892_v41 = vadd.f32 1.0, %v891_v19 }
 0x209   : > { %2287 = vpow2.f32 %v862_v1  ;;  %v834_v17 = vand.u32 2147483647, %v2871_v12  ;;  %v2033_v18 = vpop.f32.mrb[12].mxu0  ;;  %v872_v33 = vmul.f32 1.442695, %v848_v14  ;;  %v2892_v47 = vpop.eup %2283  ;;  %v900_v1 = vmul.f32 -0.5, %v2883_v30 }
 0x20a   : > { %2289 = vpow2.f32 %v866_v5  ;;  %v851_v21 = vsub.f32 0.0, %v835_v15  ;;  %v2877_v23 = vadd.f32 %v2033_v18, %v2821_v22  ;;  %v789_v25 = vpop.f32.mrb[13].mxu0  ;;  %v893_v60 = vmul.f32 %v2862_v0, %v892_v41 }
 0x20b   : > { %2291 = vpow2.f32 %v864_v11  ;;  %v850_v27 = vsub.f32 0.0, %v834_v17  ;;  %v2880_v28 = vadd.f32 %v2821_v22, %v789_v25  ;;  %v906_v5 = vadd.f32 1.0, %v2892_v47 }
 0x20c   : > { %2293 = vpow2.f32 %v870_v13  ;;  %v837_v35 = vand.u32 2147483647, %v2877_v23  ;;  %v878_v42 = vmul.f32 1.442695, %v851_v21  ;;  %v812_v8 = vmax.f32 %v2842_v40, 0.0 }
 0x20d   : > { %2295 = vpow2.f32 %v868_v16  ;;  %v836_v37 = vand.u32 2147483647, %v2880_v28  ;;  %v2036_v39 = vpop.f32.mrb[14].mxu0  ;;  %v876_v49 = vmul.f32 1.442695, %v850_v27  ;;  %v909_v14 = vmul.f32 -0.5, %v2892_v47 }
 0x20e   : > { %2297 = vpow2.f32 %v874_v20  ;;  %v853_v45 = vsub.f32 0.0, %v837_v35  ;;  %v2890_v26 = vadd.f32 %v2036_v39, %v2821_v22  ;;  %v799_v46 = vpop.f32.mrb[15].mxu0  ;;  %vm895_vm0 = vcmp.lt.f32.partialorder %v894_v56, 0.0004427343 }
 0x20f   : > { %v852_v50 = vsub.f32 0.0, %v836_v37  ;;  %v2895_v52 = vadd.f32 %v2821_v22, %v799_v46  ;;  %2299 = vpow2.f32 %v872_v33  ;;  %v901_v17 = vadd.f32 1.0, %v900_v1 }
 0x210   : > { %v882_v54 = vmul.f32 1.442695, %v853_v45  ;;  %v839_v55 = vand.u32 2147483647, %v2890_v26  ;;  %2301 = vlog2.f32 %v897_v53  ;;  %v815_v20 = vmax.f32 %v2847_v48, 0.0 }
 0x211   : > { %v838_v59 = vand.u32 2147483647, %v2895_v52  ;;  %2303 = vpow2.f32 %v878_v42  ;;  %v880_v63 = vmul.f32 1.442695, %v852_v50  ;;  %v814_v21 = vmax.f32 %v2851_v51, 0.0 }
 0x212   : > { %v2286_v62 = vpop.eup %2285  ;;  %v855_v22 = vsub.f32 0.0, %v839_v55  ;;  %2305 = vpow2.f32 %v876_v49  ;;  %v903_v25 = vand.u32 2147483647, %v2883_v30  ;;  %v912_v35 = vand.u32 2147483647, %v2892_v47 }
 0x213   : > { %v2904_v2 = vpop.eup %2287  ;;  %v854_v3 = vsub.f32 0.0, %v838_v59  ;;  %v890_v4 = vmul.f32 0.6931472, %v2286_v62  ;;  %2307 = vpow2.f32 %v882_v54  ;;  %v817_v37 = vmax.f32 %v2856_v58, 0.0 }
 0x214   : > { %v2907_v6 = vpop.eup %2289  ;;  %v886_v0 = vmul.f32 1.442695, %v855_v22  ;;  %2309 = vlog2.f32 %v906_v5  ;;  %v915_v18 = vadd.f32 1.0, %v2904_v2  ;;  %v910_v39 = vadd.f32 1.0, %v909_v14 }
 0x215   : > { %v2910_v9 = vpop.eup %2291  ;;  %v884_v11 = vmul.f32 1.442695, %v854_v3  ;;  %v896_v13 = vsel %vm895_vm0, %v893_v60, %v890_v4  ;;  %2311 = vpow2.f32 %v880_v63  ;;  %v918_v41 = vmul.f32 -0.5, %v2904_v2 }
 0x216   : > { %v2913_v15 = vpop.eup %2293  ;;  %v1032_v16 = vadd.f32 %v896_v13, %v808_v29  ;;  %2313 = vpow2.f32 %v886_v0  ;;  %v924_v29 = vadd.f32 1.0, %v2910_v9  ;;  %v902_v45 = vmul.f32 %v2883_v30, %v901_v17 }
 0x217   : > { %v2916_v19 = vpop.eup %2295  ;;  %2315 = vlog2.f32 %v915_v18  ;;  %v921_v46 = vand.u32 2147483647, %v2904_v2  ;;  %v933_v49 = vadd.f32 1.0, %v2907_v6  ;;  %v927_v53 = vmul.f32 -0.5, %v2910_v9 }
 0x218   : > { %v2921_v27 = vpop.eup %2297  ;;  %v1836_v33 = vadd.f32 -0.6931472, %v1032_v16  ;;  %2317 = vpow2.f32 %v884_v11  ;;  %v930_v54 = vand.u32 2147483647, %v2910_v9  ;;  %v936_v55 = vmul.f32 -0.5, %v2907_v6 }
 0x219   : > { %v2927_v42 = vpop.eup %2299  ;;  %2319 = vlog2.f32 %v924_v29  ;;  %v942_v56 = vadd.f32 1.0, %v2916_v19  ;;  %vm904_vm2 = vcmp.lt.f32.partialorder %v903_v25, 0.0004427343  ;;  %vm2938_vm3 = vcmp.lt.f32.partialorder %v912_v35, 0.0004427343 }
 0x21a   : > { %2069 = vmatprep.mubr.f32.mxu1 %v1836_v33  ;;  %v2302_v50 = vpop.eup %2301  ;;  %2321 = vlog2.f32 %v933_v49  ;;  %v911_v63 = vmul.f32 %v2892_v47, %v910_v39  ;;  %v919_v22 = vadd.f32 1.0, %v918_v41  ;;  %v939_v1 = vand.u32 2147483647, %v2907_v6 }
 0x21b   : > { %v2936_v59 = vpop.eup %2303  ;;  %v899_v60 = vmul.f32 0.6931472, %v2302_v50  ;;  %2323 = vlog2.f32 %v942_v56  ;;  %vm2948_vm4 = vcmp.lt.f32.partialorder %v921_v46, 0.0004427343  ;;  %v945_v0 = vmul.f32 -0.5, %v2916_v19 }
 0x21c   : > { %v2942_v62 = vpop.eup %2305  ;;  %v951_v11 = vadd.f32 1.0, %v2913_v15  ;;  %v928_v47 = vadd.f32 1.0, %v927_v53  ;;  %vm2956_vm5 = vcmp.lt.f32.partialorder %v930_v54, 0.0004427343  ;;  %v937_v17 = vadd.f32 1.0, %v936_v55 }
 0x21d   : > { %v2946_v3 = vpop.eup %2307  ;;  %v905_v4 = vsel %vm904_vm2, %v902_v45, %v899_v60  ;;  %v948_v33 = vand.u32 2147483647, %v2916_v19  ;;  %v960_v35 = vadd.f32 1.0, %v2927_v42  ;;  %v920_v24 = vmul.f32 %v2904_v2, %v919_v22 }
 0x21e   : > { %v2310_v13 = vpop.eup %2309  ;;  %v1033_v14 = vadd.f32 %v905_v4, %v809_v10  ;;  %2325 = vlog2.f32 %v951_v11  ;;  %vm2967_vm6 = vcmp.lt.f32.partialorder %v939_v1, 0.0004427343  ;;  %v954_v41 = vmul.f32 -0.5, %v2913_v15 }
 0x21f   : > { %v2960_v18 = vpop.eup %2311  ;;  %v908_v25 = vmul.f32 0.6931472, %v2310_v13  ;;  %v946_v49 = vadd.f32 1.0, %v945_v0  ;;  %2327 = vlog2.f32 %v960_v35  ;;  %v963_v50 = vmul.f32 -0.5, %v2927_v42 }
 0x220   : > { %v2964_v29 = vpop.eup %2313  ;;  %v1837_v39 = vadd.f32 -0.6931472, %v1033_v14  ;;  %v929_v55 = vmul.f32 %v2910_v9, %v928_v47  ;;  %v969_v56 = vadd.f32 1.0, %v2921_v27  ;;  %v938_v22 = vmul.f32 %v2907_v6, %v937_v17 }
 0x221   : > { %v2316_v45 = vpop.eup %2315  ;;  %v914_v46 = vsel %vm2938_vm3, %v911_v63, %v908_v25  ;;  %vm2982_vm7 = vcmp.lt.f32.partialorder %v948_v33, 0.0004427343  ;;  %v957_v63 = vand.u32 2147483647, %v2913_v15  ;;  %v978_v1 = vadd.f32 1.0, %v2942_v62 }
 0x222   : > { %v2975_v53 = vpop.eup %2317  ;;  %2070 = vmatmul.mubr.f32.vlgmr.msra.gmra.mrb[0].mxu1 %v1837_v39  ;;  %v1034_v2 = vadd.f32 %v914_v46, %v810_v36  ;;  %v917_v54 = vmul.f32 0.6931472, %v2316_v45  ;;  %v955_v0 = vadd.f32 1.0, %v954_v41  ;;  %v947_v6 = vmul.f32 %v2916_v19, %v946_v49 }
 0x223   : > { %v2320_v60 = vpop.eup %2319  ;;  %v964_v13 = vadd.f32 1.0, %v963_v50  ;;  %2329 = vlog2.f32 %v969_v56  ;;  %v972_v25 = vmul.f32 -0.5, %v2921_v27  ;;  %v981_v34 = vmul.f32 -0.5, %v2942_v62 }
 0x224   : > { %v1838_v4 = vadd.f32 -0.6931472, %v1034_v2  ;;  %v923_v32 = vsel %vm2948_vm4, %v920_v24, %v917_v54  ;;  %v926_v36 = vmul.f32 0.6931472, %v2320_v60  ;;  %v2322_v9 = vpop.eup %2321  ;;  %2331 = vlog2.f32 %v978_v1 }
 0x225   : > { %v1035_v11 = vadd.f32 %v923_v32, %v811_v31  ;;  %v2324_v14 = vpop.eup %2323  ;;  %v935_v17 = vmul.f32 0.6931472, %v2322_v9  ;;  %v956_v19 = vmul.f32 %v2913_v15, %v955_v0  ;;  %vm3002_vm8 = vcmp.lt.f32.partialorder %v957_v63, 0.0004427343 }
 0x226   : > { %2072 = vmatprep.mubr.f32.mxu1 %v1838_v4  ;;  %v932_v47 = vsel %vm2956_vm5, %v929_v55, %v926_v36  ;;  %v944_v35 = vmul.f32 0.6931472, %v2324_v14  ;;  %v987_v16 = vadd.f32 1.0, %v2936_v59  ;;  %v966_v10 = vand.u32 2147483647, %v2927_v42 }
 0x227   : > { %v1839_v5 = vadd.f32 -0.6931472, %v1035_v11  ;;  %v1036_v33 = vadd.f32 %v932_v47, %v812_v8  ;;  %v941_v31 = vsel %vm2967_vm6, %v938_v22, %v935_v17  ;;  %v965_v46 = vmul.f32 %v2927_v42, %v964_v13 }
 0x228   : > { %v2326_v24 = vpop.eup %2325  ;;  %v1037_v40 = vadd.f32 %v941_v31, %v813_v57  ;;  %v950_v8 = vsel %vm2982_vm7, %v947_v6, %v944_v35  ;;  %v975_v49 = vand.u32 2147483647, %v2921_v27  ;;  %v973_v54 = vadd.f32 1.0, %v972_v25 }
 0x229   : > { %2073 = vmatmul.mubr.f32.gmra.mrb[2].mxu1 %v1839_v5  ;;  %v1840_v41 = vadd.f32 -0.6931472, %v1036_v33  ;;  %v1038_v15 = vadd.f32 %v950_v8, %v814_v21  ;;  %v953_v45 = vmul.f32 0.6931472, %v2326_v24  ;;  %v2328_v50 = vpop.eup %2327  ;;  %v982_v55 = vadd.f32 1.0, %v981_v34 }
 0x22a   : > { %v1841_v2 = vadd.f32 -0.6931472, %v1037_v40  ;;  %2333 = vlog2.f32 %v987_v16  ;;  %v962_v56 = vmul.f32 0.6931472, %v2328_v50  ;;  %v996_v60 = vadd.f32 1.0, %v2960_v18 }
 0x22b   : > { %2075 = vmatprep.mubr.f32.mxu1 %v1840_v41  ;;  %v1842_v38 = vadd.f32 -0.6931472, %v1038_v15  ;;  %v959_v57 = vsel %vm3002_vm8, %v956_v19, %v953_v45  ;;  %v816_v51 = vmax.f32 %v2859_v61, 0.0  ;;  %vm967_vm9 = vcmp.lt.f32.partialorder %v966_v10, 0.0004427343 }
 0x22c   : > { %v1039_v21 = vadd.f32 %v959_v57, %v815_v20  ;;  %v990_v42 = vmul.f32 -0.5, %v2936_v59  ;;  %v968_v22 = vsel %vm967_vm9, %v965_v46, %v962_v56  ;;  %v984_v30 = vand.u32 2147483647, %v2942_v62 }
 0x22d   : > { %2076 = vmatmul.mubr.f32.gmra.mrb[4].mxu1 %v1841_v2  ;;  %2335 = vlog2.f32 %v996_v60  ;;  %v1005_v63 = vadd.f32 1.0, %v2946_v3  ;;  %v2330_v1 = vpop.eup %2329  ;;  %v818_v4 = vmax.f32 %v2871_v12, 0.0  ;;  %v1040_v36 = vadd.f32 %v968_v22, %v816_v51 }
 0x22e   : > { %2078 = vmatprep.mubr.f32.mxu1 %v1842_v38  ;;  %v1843_v32 = vadd.f32 -0.6931472, %v1039_v21  ;;  %vm3026_vm10 = vcmp.lt.f32.partialorder %v975_v49, 0.0004427343  ;;  %v2332_v48 = vpop.eup %2331  ;;  %v971_v20 = vmul.f32 0.6931472, %v2330_v1  ;;  %v974_v0 = vmul.f32 %v2921_v27, %v973_v54 }
 0x22f   : > { %v983_v9 = vmul.f32 %v2942_v62, %v982_v55  ;;  %2337 = vlog2.f32 %v1005_v63  ;;  %v1844_v11 = vadd.f32 -0.6931472, %v1040_v36  ;;  %v980_v6 = vmul.f32 0.6931472, %v2332_v48 }
 0x230   : > { %v991_v13 = vadd.f32 1.0, %v990_v42  ;;  %v999_v14 = vmul.f32 -0.5, %v2960_v18  ;;  %v977_v12 = vsel %vm3026_vm10, %v974_v0, %v971_v20  ;;  %vm985_vm11 = vcmp.lt.f32.partialorder %v984_v30, 0.0004427343 }
 0x231   : > { %2079 = vmatmul.mubr.f32.gmra.mrb[6].mxu1 %v1843_v32  ;;  %v1008_v47 = vmul.f32 -0.5, %v2946_v3  ;;  %v1014_v17 = vadd.f32 1.0, %v2975_v53  ;;  %v1041_v27 = vadd.f32 %v977_v12, %v817_v37  ;;  %v986_v62 = vsel %vm985_vm11, %v983_v9, %v980_v6 }
 0x232   : > { %2081 = vmatprep.mubr.f32.mxu1 %v1844_v11  ;;  %v993_v25 = vand.u32 2147483647, %v2936_v59  ;;  %v1042_v5 = vadd.f32 %v986_v62, %v818_v4  ;;  %v1023_v33 = vadd.f32 1.0, %v2964_v29  ;;  %v992_v31 = vmul.f32 %v2936_v59, %v991_v13 }
 0x233   : > { %2339 = vlog2.f32 %v1014_v17  ;;  %v1845_v34 = vadd.f32 -0.6931472, %v1041_v27  ;;  %v1000_v19 = vadd.f32 1.0, %v999_v14  ;;  %v1002_v39 = vand.u32 2147483647, %v2960_v18 }
 0x234   : > { %v2334_v35 = vpop.eup %2333  ;;  %v1846_v16 = vadd.f32 -0.6931472, %v1042_v5  ;;  %v1009_v41 = vadd.f32 1.0, %v1008_v47  ;;  %2341 = vlog2.f32 %v1023_v33  ;;  %v819_v58 = vmax.f32 %v2866_v7, 0.0 }
 0x235   : > { %v989_v24 = vmul.f32 0.6931472, %v2334_v35  ;;  %2082 = vmatmul.mubr.f32.gmra.mrb[8].mxu1 %v1845_v34  ;;  %vm994_vm12 = vcmp.lt.f32.partialorder %v993_v25, 0.0004427343  ;;  %v1017_v37 = vmul.f32 -0.5, %v2975_v53  ;;  %v1001_v45 = vmul.f32 %v2960_v18, %v1000_v19  ;;  %v1256_v34 = vpop.permute.xlu1 %1255  ;;  %v1251_v19 = vpop.permute.xlu0 %1250 }
 0x236   : > { %2084 = vmatprep.mubr.f32.mxu1 %v1846_v16  ;;  %v1011_v10 = vand.u32 2147483647, %v2946_v3  ;;  %v1026_v46 = vmul.f32 -0.5, %v2964_v29  ;;  %v820_v50 = vmax.f32 %v2880_v28, 0.0  ;;  %vm1003_vm13 = vcmp.lt.f32.partialorder %v1002_v39, 0.0004427343 }
 0x237   : > { %v2336_v40 = vpop.eup %2335  ;;  %v995_v8 = vsel %vm994_vm12, %v992_v31, %v989_v24  ;;  %v1010_v7 = vmul.f32 %v2946_v3, %v1009_v41  ;;  %v1018_v38 = vadd.f32 1.0, %v1017_v37  ;;  %v821_v57 = vmax.f32 %v2877_v23, 0.0  ;;  %v3077_v31 = vld [vmem:[%s3191_s8] ss:$0 sm:$0xff] }
 0x238   : > { %v1043_v15 = vadd.f32 %v995_v8, %v819_v58  ;;  %v998_v59 = vmul.f32 0.6931472, %v2336_v40  ;;  %vm1012_vm14 = vcmp.lt.f32.partialorder %v1011_v10, 0.0004427343  ;;  %v1020_v60 = vand.u32 2147483647, %v2975_v53 }
 0x239   : > { %v2338_v49 = vpop.eup %2337  ;;  %v1027_v51 = vadd.f32 1.0, %v1026_v46  ;;  %v1029_v28 = vand.u32 2147483647, %v2964_v29  ;;  %v1019_v3 = vmul.f32 %v2975_v53, %v1018_v38  ;;  %v822_v1 = vmax.f32 %v2895_v52, 0.0  ;;  %v1266_v37 = vpop.permute.xlu1 %1265 }
 0x23a   : > { %v1847_v2 = vadd.f32 -0.6931472, %v1043_v15  ;;  %v1004_v54 = vsel %vm1003_vm13, %v1001_v45, %v998_v59  ;;  %v1007_v55 = vmul.f32 0.6931472, %v2338_v49  ;;  %vm1021_vm15 = vcmp.lt.f32.partialorder %v1020_v60, 0.0004427343  ;;  %v1261_v8 = vpop.permute.xlu0 %1260 }
 0x23b   : > { %v1044_v56 = vadd.f32 %v1004_v54, %v820_v50  ;;  %v1028_v36 = vmul.f32 %v2964_v29, %v1027_v51  ;;  %v823_v61 = vmax.f32 %v2890_v26, 0.0  ;;  %vm1030_vm1 = vcmp.lt.f32.partialorder %v1029_v28, 0.0004427343 }
 0x23c   : > { %2085 = vmatmul.mubr.f32.gmra.mrb[10].mxu1 %v1847_v2  ;;  %v1013_v18 = vsel %vm1012_vm14, %v1010_v7, %v1007_v55  ;;  %vm2442_vm0 = vmmov 0  }
 0x23d   : > { %v2340_v21 = vpop.eup %2339  ;;  %v1848_v42 = vadd.f32 -0.6931472, %v1044_v56  ;;  %v1045_v22 = vadd.f32 %v1013_v18, %v821_v57  ;;  %v1276_v7 = vpop.permute.xlu1 %1275 }
 0x23e   : > { %v1016_v30 = vmul.f32 0.6931472, %v2340_v21  ;;  %v2342_v63 = vpop.eup %2341  ;;  %v1271_v54 = vpop.permute.xlu0 %1270 }
 0x23f   : > { %2087 = vmatprep.mubr.f32.mxu1 %v1848_v42  ;;  %v1849_v23 = vadd.f32 -0.6931472, %v1045_v22  ;;  %v1025_v32 = vmul.f32 0.6931472, %v2342_v63 }
 0x240   : > { %v1022_v4 = vsel %vm1021_vm15, %v1019_v3, %v1016_v30 }
 0x241   : > { %2088 = vmatmul.mubr.f32.gmra.mrb[12].mxu1 %v1849_v23  ;;  %v1046_v48 = vadd.f32 %v1022_v4, %v822_v1  ;;  %v1031_v20 = vsel %vm1030_vm1, %v1028_v36, %v1025_v32  ;;  %v1286_v30 = vpop.permute.xlu1 %1285 }
 0x242   : > { %v1047_v9 = vadd.f32 %v1031_v20, %v823_v61  ;;  %v1281_v23 = vpop.permute.xlu0 %1280 }
 0x243   : > { %v1850_v0 = vadd.f32 -0.6931472, %v1046_v48 }
 0x244   : > { %v1851_v53 = vadd.f32 -0.6931472, %v1047_v9 }
 0x245   : > { %2090 = vmatprep.mubr.f32.mxu1 %v1850_v0 }
 0x246   : > { %2091 = vmatmul.mubr.f32.gmra.mrb[14].mxu1 %v1851_v53  ;;  %v1296_v53 = vpop.permute.xlu1 %1295 }
 0x247   : > { %2127 = vmatprep.mubr.msk.bf16.mxu1 %vm2442_vm0, %v2441_v44 }
 0x276   : > { %v2097_v11 = vpop.f32.mrb[16].mxu0 }
 0x277   : > { %v1525_v52 = vpop.f32.mrb[17].mxu0 }
 0x278   : > { %v2098_v6 = vpop.f32.mrb[18].mxu0 }
 0x279   : > { %v1528_v13 = vpop.f32.mrb[19].mxu0 }
 0x27e   : > { %v2101_v14 = vpop.f32.mrb[20].mxu0 }
 0x27f   : > { %v1541_v12 = vpop.f32.mrb[21].mxu0 }
 0x280   : > { %v2102_v47 = vpop.f32.mrb[22].mxu0 }
 0x281   : > { %v1544_v17 = vpop.f32.mrb[23].mxu0 }
 0x286   : > { %v3057_v29 = vpop.f32.mrb[24].mxu0 }
 0x287   : > { %v3059_v26 = vpop.f32.mrb[25].mxu0 }
 0x288   : > { %v3061_v27 = vpop.f32.mrb[26].mxu0 }
 0x289   : > { %v3063_v62 = vpop.f32.mrb[27].mxu0 }
 0x28e   : > { %v3065_v25 = vpop.f32.mrb[28].mxu0 }
 0x28f   : > { %v3067_v5 = vpop.f32.mrb[29].mxu0 }
 0x290   : > { %v3069_v33 = vpop.f32.mrb[30].mxu0 }
 0x291   : > { %v3071_v35 = vpop.f32.mrb[31].mxu0 }
 0x2f5   : > { %v2071_v39 = vpop.f32.mrb[0].mxu1 }
 0x2f6   : > { %v1159_v16 = vadd.f32 %v2071_v39, %v3077_v31  ;;  %v1153_v24 = vpop.f32.mrb[1].mxu1  ;;  %v1306_v39 = vpop.permute.xlu1 %1305 }
 0x2f7   : > { %v1154_v41 = vadd.f32 %v3077_v31, %v1153_v24 }
 0x2f8   : > { %v1329_v58 = vmul.f32 %v1256_v34, %v1159_v16 }
 0x2f9   : > { %v1328_v40 = vmul.f32 %v1251_v19, %v1154_v41 }
 0x2fa   : > { %v1589_v10 = vmul.f32 %v1528_v13, %v1329_v58 }
 0x2fb   : > { %v1588_v15 = vmul.f32 %v1525_v52, %v1328_v40 }
 0x2fc   : > { %v2074_v59 = vpop.f32.mrb[2].mxu1 }
 0x2fd   : > { %v1621_v45 = vpack.c.bf16 %v1589_v10, %v1588_v15  ;;  %v1169_v46 = vadd.f32 %v2074_v59, %v3077_v31  ;;  %v1163_v49 = vpop.f32.mrb[3].mxu1 }
 0x2fe   : > { %v1164_v50 = vadd.f32 %v3077_v31, %v1163_v49 }
 0x2ff   : > { %v1331_v2 = vmul.f32 %v1266_v37, %v1169_v46  ;;  %2112 = vmatpush3.bf16.msra.mxu1 %v1621_v45  ;;  %v1316_v45 = vpop.permute.xlu1 %1315 }
 0x300   : > { %v1330_v55 = vmul.f32 %v1261_v8, %v1164_v50  ;;  %v2077_v38 = vpop.f32.mrb[4].mxu1  ;;  %2113 = vmatprep.subr.bf16.mxu1 %v2441_v44 }
 0x301   : > { %v1591_v57 = vmul.f32 %v2098_v6, %v1331_v2  ;;  %v1179_v56 = vadd.f32 %v2077_v38, %v3077_v31  ;;  %v1173_v60 = vpop.f32.mrb[5].mxu1  ;;  %v1291_v6 = vpop.permute.xlu0 %1290 }
 0x302   : > { %v1590_v18 = vmul.f32 %v2097_v11, %v1330_v55  ;;  %v1174_v51 = vadd.f32 %v3077_v31, %v1173_v60 }
 0x303   : > { %v1333_v21 = vmul.f32 %v1276_v7, %v1179_v56  ;;  %v1326_v56 = vpop.permute.xlu1 %1325 }
 0x304   : > { %v1622_v42 = vpack.c.bf16 %v1591_v57, %v1590_v18  ;;  %v1332_v22 = vmul.f32 %v1271_v54, %v1174_v51  ;;  %v2080_v28 = vpop.f32.mrb[6].mxu1 }
 0x305   : > { %v1593_v3 = vmul.f32 %v1544_v17, %v1333_v21  ;;  %v1189_v63 = vadd.f32 %v2080_v28, %v3077_v31  ;;  %v1183_v1 = vpop.f32.mrb[7].mxu1  ;;  %v1301_v41 = vpop.permute.xlu0 %1300  ;;  %v2443_v28 = vmov 1.0|1.0  }
 0x306   : > { %v1592_v4 = vmul.f32 %v1541_v12, %v1332_v22  ;;  %v1184_v32 = vadd.f32 %v3077_v31, %v1183_v1  ;;  %2114 = vmatpush3.bf16.msra.mxu1 %v1622_v42 }
 0x307   : > { %v1335_v36 = vmul.f32 %v1286_v30, %v1189_v63  ;;  %2115 = vmatprep.subr.bf16.mxu1 %v2441_v44  ;;  %v1619_v30 = vld [vmem:[%s2597_s22] sm:$0xff] }
 0x308   : > { %v1623_v61 = vpack.c.bf16 %v1593_v3, %v1592_v4  ;;  %v1334_v48 = vmul.f32 %v1281_v23, %v1184_v32  ;;  %v2083_v9 = vpop.f32.mrb[8].mxu1 }
 0x309   : > { %v1595_v20 = vmul.f32 %v2102_v47, %v1335_v36  ;;  %v1199_v11 = vadd.f32 %v2083_v9, %v3077_v31  ;;  %v1193_v52 = vpop.f32.mrb[9].mxu1  ;;  %v1311_v49 = vpop.permute.xlu0 %1310 }
 0x30a   : > { %v1594_v0 = vmul.f32 %v2101_v14, %v1334_v48  ;;  %2116 = vmatpush3.bf16.msra.mxu1 %v1623_v61  ;;  %v1194_v12 = vadd.f32 %v3077_v31, %v1193_v52 }
 0x30b   : > { %2117 = vmatprep.subr.bf16.mxu1 %v2441_v44  ;;  %v1337_v17 = vmul.f32 %v1296_v53, %v1199_v11 }
 0x30c   : > { %v1624_v13 = vpack.c.bf16 %v1595_v20, %v1594_v0  ;;  %v1336_v34 = vmul.f32 %v1291_v6, %v1194_v12 }
 0x30d   : > { %v1597_v19 = vmul.f32 %v3063_v62, %v1337_v17  ;;  %v1321_v51 = vpop.permute.xlu0 %1320 }
 0x30e   : > { %2118 = vmatpush3.bf16.msra.mxu1 %v1624_v13  ;;  %v1596_v14 = vmul.f32 %v3059_v26, %v1336_v34 }
 0x30f   : > { %2119 = vmatprep.subr.bf16.mxu1 %v2441_v44  ;;  %v2086_v47 = vpop.f32.mrb[10].mxu1 }
 0x310   : > { %v1209_v16 = vadd.f32 %v2086_v47, %v3077_v31  ;;  %v1203_v24 = vpop.f32.mrb[11].mxu1  ;;  %v1625_v58 = vpack.c.bf16 %v1597_v19, %v1596_v14 }
 0x311   : > { %v1204_v37 = vadd.f32 %v3077_v31, %v1203_v24 }
 0x312   : > { %v1339_v40 = vmul.f32 %v1306_v39, %v1209_v16  ;;  %2120 = vmatpush3.bf16.msra.mxu1 %v1625_v58 }
 0x313   : > { %v1338_v8 = vmul.f32 %v1301_v41, %v1204_v37  ;;  %2121 = vmatprep.subr.bf16.mxu1 %v2441_v44 }
 0x314   : > { %v1599_v10 = vmul.f32 %v3061_v27, %v1339_v40  ;;  %v2089_v15 = vpop.f32.mrb[12].mxu1  ;;  %v1605_v27 = vshrl.u32 %v1344_v43, 7  ;;  %v1877_v43 = vld [vmem:[%s483_s20] ss:$0 sm:$0xff]  ;;  %s1688_s20 = sshll.u32 %s2597_s22, 4  ;;  %s3125_s20 = int_to_ptr.vmem [resolvable:$true] %s1688_s20 }
 0x315   : > { %v1598_v62 = vmul.f32 %v3057_v29, %v1338_v8  ;;  %v1219_v26 = vadd.f32 %v2089_v15, %v3077_v31  ;;  %v1213_v59 = vpop.f32.mrb[13].mxu1  ;;  %s2343_s15 = scalar_lea.vmem %s3125_s20, 256  ;;  %p2350_p5 = scmp.lt.s32.totalorder %s3125_s20, %s2348_s26 }
 0x316   : > { %v1214_v46 = vadd.f32 %v3077_v31, %v1213_v59  ;;  %vm1612_vm2 = vcmp.eq.s32.totalorder %v1605_v27, %v1877_v43  ;;  %p2344_p1 = scmp.ne.s32.totalorder %s3125_s20, %s2343_s15  ;;  %p2351_p6 = scmp.lt.s32.totalorder %s2349_s16, %s2343_s15 }
 0x317   : > { %v1626_v50 = vpack.c.bf16 %v1599_v10, %v1598_v62  ;;  %v1341_v7 = vmul.f32 %v1316_v45, %v1219_v26 }
 0x318   : > { %v1340_v2 = vmul.f32 %v1311_v49, %v1214_v46  ;;  %p2345_p2 = pnand %p2344_p1, %p2551_p3  ;;  %p2352_p7 = por %p2351_p6, %p2350_p5 }
 0x319   : > { %v1601_v54 = vmul.f32 %v3071_v35, %v1341_v7  ;;  %2122 = vmatpush3.bf16.msra.mxu1 %v1626_v50  ;;  %v2092_v38 = vpop.f32.mrb[14].mxu1  ;;  %v1606_v35 = vadd.s32 8, %v1605_v27 }
 0x31a   : > { %v1600_v55 = vmul.f32 %v3067_v5, %v1340_v2  ;;  %2123 = vmatprep.subr.bf16.mxu1 %v2441_v44  ;;  %v1229_v29 = vadd.f32 %v2092_v38, %v3077_v31  ;;  %v1223_v57 = vpop.f32.mrb[15].mxu1  ;;  %p2346_p4 = pneg %p2345_p2 }
 0x31b   : > { %v1224_v18 = vadd.f32 %v3077_v31, %v1223_v57  ;;  %vm1613_vm3 = vcmp.eq.s32.totalorder %v1606_v35, %v1877_v43 }
 0x31c   : > { %v1627_v60 = vpack.c.bf16 %v1601_v54, %v1600_v55  ;;  %v1343_v21 = vmul.f32 %v1326_v56, %v1229_v29  ;;  %vm1880_vm4 = vmpackc.low %vm1613_vm3, %vm1612_vm2  ;;  %p2353_p8 = pnand %p2352_p7, %p2346_p4 }
 0x31d   : > { %v1342_v42 = vmul.f32 %v1321_v51, %v1224_v18 }
 0x31e   : > { %2124 = vmatpush3.bf16.msra.mxu1 %v1627_v60  ;;  %v1603_v5 = vmul.f32 %v3069_v33, %v1343_v21  ;;  %v1620_v33 = vld [vmem:[%s2597_s22 + $0x8] sm:$0xff] }
 0x31f   : > { %2125 = vmatprep.subr.bf16.mxu1 %v2441_v44  ;;  %v1602_v31 = vmul.f32 %v3065_v25, %v1342_v42 }
 0x321   : > { %v1628_v22 = vpack.c.bf16 %v1603_v5, %v1602_v31 }
 0x323   : > { %2126 = vmatpush3.bf16.msra.mxu1 %v1628_v22 }
 0x326   : > { %2128 = vmatmul.mubr.msk.bf16.vlgmr.msra.gmra.mrb[16].mxu1 %vm1880_vm4, %v2443_v28 }
 0x3f9   : > { %v1663_v3 = vpop.f32.mrb[16].mxu1 }
 0x3fa   : > { %v1670_v63 = vadd.f32 %v1663_v3, %v1619_v30  ;;  %v2129_v44 = vpop.f32.mrb[17].mxu1 }
 0x3fb   : > { %v1666_v1 = vpop.f32.mrb[18].mxu1 }
 0x3fc   : > { %1672 = vst [vmem:[%s2597_s22] sm:$0xff] %v1670_v63  ;;  %v1671_v25 = vadd.f32 %v1666_v1, %v1620_v33  ;;  %v2130_v23 = vpop.f32.mrb[19].mxu1 }
 0x3fe   : > { %1673 = vst [vmem:[%s2597_s22 + $0x8] sm:$0xff] %v1671_v25 }
 0x3ff   : > { %2356 = shalt.err (!%p2353_p8)
}
 0x400   : > { %s2357_s22 = scalar_lea.hbm %s3123_s27, 256  ;;  %s2361_s29 = scalar_lea.hbm %s3193_s10, 512 }
 0x401   : > { %p2358_p10 = scmp.ne.s32.totalorder %s3123_s27, %s2357_s22  ;;  %p2362_p13 = scmp.lt.u32.totalorder %s3123_s27, %s3193_s10 }
 0x402   : > { %p2363_p0 = scmp.lt.u32.totalorder %s2361_s29, %s2357_s22  ;;  %p2365_p2 = scmp.lt.u32.totalorder %s2357_s22, %s3123_s27 }
 0x403   : > { %p2359_p11 = pnand %p2358_p10, %p2551_p3 }
 0x404   : > { %p2364_p1 = por %p2363_p0, %p2362_p13 }
 0x405   : > { %p2360_p12 = pneg %p2359_p11 }
 0x406   : > { %p2366_p4 = por %p2365_p2, %p2364_p1 }
 0x408   : > { %p2367_p5 = pnand %p2366_p4, %p2360_p12 }
 0x40a   : > { %2370 = shalt.err (!%p2367_p5)
}
 0x40b   : > { %s2445_s18 = smov 128   ;;  %s2446_s21 = smov 8  }
 0x40c   : > { %2199 = dma.vmem_to_hbm [thread:$0]  (%p2551_p3), %s3125_s20, 256, %s3123_s27, %s3131_s13, %s2445_s18, %s2445_s18, %s2446_s21  }
 0x40d PF: > { %s3229_s19 = sld [smem:[#allocation10_spill]]  ;;  %s3230_s30 = sld [smem:[#allocation6_spill]] }
 0x413   : > { %p2205_p6 = scmp.ge.s32.totalorder %s3229_s19, 2  ;;  %s1703_s15 = sand.u32 1, %s3230_s30  }
 0x414   : > { %s1704_s23 = scalar_lea.sflag [#allocation4], %s1703_s15 }
 0x415   : > { %p2202_p7 = pnand %p2205_p6, %p2561_p9 }
 0x417   : > { %2404 = dma.done.wait (!%p2202_p7), %s1704_s23, 256  }
 0x418   : > { %2406 = vsyncadd (!%p2202_p7), %s1704_s23, 4294967040  ;;  %s23_s20 = sadd.s32 1, %s3229_s19   ;;  %s3232_s26 = sld [smem:[#allocation7_spill]] }
 0x419   : > { %p20_p8 = scmp.ge.s32.totalorder %s23_s20, 6   ;;  %s3233_s15 = sld [smem:[#allocation14_spill]] }
 0x41a   : > { %s3234_s16 = sld [smem:[#allocation8_spill]]  ;;  %s3235_s17 = sld [smem:[#allocation9_spill]] }
 0x41b   : > { %s3236_s18 = sld [smem:[#allocation11_spill]]  ;;  %s3237_s19 = sld [smem:[#allocation12_spill]] }
 0x41c   : > { %s3238_s13 = smov %s2413_s14  ;;  %22 = sbr.rel (!%p20_p8) target bundleno = 5 (0x5), region = 108 }
 0x41e   : > { %s3239_s14 = smov %s3232_s26 }
 0x423   :  { %1709 = vsyncpa [#allocation4], 1 }
 0x424   :  { %1711 = vsyncpa [#allocation4 + $0x1], 1 }

</bundles_post_ra>
